<compile_context>
chip_gen: v6e
topology: v6e:2x2x1
jax: 0.10.0
libtpu: 0.0.40
codegen_flags: <defaults>
</compile_context>

<pallas_src>
import jax
import jax.numpy as jnp
from jax.experimental import pallas as pl
from jax.experimental.pallas import tpu as pltpu

IGNORE_INDEX = 255
SMOOTH_FACTOR = 0.05   # SoftCrossEntropyLoss smooth_factor
DICE_SMOOTH = 0.05     # DiceLoss smooth
DICE_EPS = 1e-7        # DiceLoss eps (clamp_min on denominator)

# stat slots in the (B, nheads, 5, C, 128) partial-sum output
_S_INTER, _S_PSUM, _S_CNT, _S_NLL, _S_SMOOTH = 0, 1, 2, 3, 4


def _fold_lanes(a):
    """(R, K*128) -> (R, 128): sum 128-aligned lane chunks (pure VPU adds)."""
    t = a.shape[-1]
    acc = a[:, 0:128]
    for k in range(1, t // 128):
        acc = acc + a[:, k * 128:(k + 1) * 128]
    return acc


def _make_stats_kernel(nheads, num_classes, tile_hw, hw_valid, needs_mask):
    c = num_classes

    def kernel(*refs):
        logit_refs = refs[:nheads]
        lbl_ref = refs[nheads]
        out_ref = refs[nheads + 1]

        @pl.when(pl.program_id(1) == 0)
        def _():
            out_ref[...] = jnp.zeros_like(out_ref)

        lbl = lbl_ref[0]                                  # (1, TILE) int32
        valid = lbl != IGNORE_INDEX                       # (1, TILE)
        if needs_mask:
            pix = jax.lax.broadcasted_iota(jnp.int32, (1, tile_hw), 1)
            pix = pix + pl.program_id(1) * tile_hw
            in_range = pix < hw_valid                     # true pixel count
            valid = jnp.logical_and(valid, in_range)
        vf = valid.astype(jnp.float32)                    # (1, TILE)

        cls_ids = jax.lax.broadcasted_iota(jnp.int32, (c, tile_hw), 0)
        onehot_v = jnp.logical_and(cls_ids == lbl, valid).astype(jnp.float32)
        cnt_part = _fold_lanes(onehot_v)                  # label-only, reused

        for h in range(nheads):
            x = logit_refs[h][0].astype(jnp.float32)      # (C, TILE)
            if needs_mask:
                # keep garbage/out-of-range logits finite so masked products
                # cannot produce NaN/Inf
                x = jnp.where(in_range, x, 0.0)

            # softmax / log-softmax over the class (sublane) axis
            m = jnp.max(x, axis=0, keepdims=True)         # (1, TILE)
            z = x - m
            e = jnp.exp(z)                                # single exp
            s = jnp.sum(e, axis=0, keepdims=True)         # (1, TILE)
            logs = jnp.log(s)
            p = e * (1.0 / s)                             # exact probs
            zsum = jnp.sum(z, axis=0, keepdims=True)      # (1, TILE)

            inter = p * onehot_v                          # (C, TILE)
            psum = p * vf                                 # (C, TILE)
            nll = (logs - z) * onehot_v                   # -logprob @ target
            smooth = vf * (c * logs - zsum)               # -sum_c logprob

            out_ref[0, h, _S_INTER] += _fold_lanes(inter)
            out_ref[0, h, _S_PSUM] += _fold_lanes(psum)
            out_ref[0, h, _S_CNT] += cnt_part
            out_ref[0, h, _S_NLL] += _fold_lanes(nll)
            out_ref[0, h, _S_SMOOTH, 0:1, :] += _fold_lanes(smooth)

    return kernel


def _afa_stats(heads, labels, tile_hw=8192):
    """One fused pallas_call producing lane-partial loss statistics."""
    nheads = len(heads)
    B, C, H, W = heads[0].shape
    HW = H * W

    xs = [jnp.reshape(h, (B, C, HW)) for h in heads]          # free reshape
    y = jnp.reshape(labels, (B, 1, HW)).astype(jnp.int32)

    # Lane axis must be 128-aligned; pad only in the rare H*W % 128 != 0 case.
    HWp = ((HW + 127) // 128) * 128
    if HWp != HW:
        pad = HWp - HW
        xs = [jnp.pad(x, ((0, 0), (0, 0), (0, pad))) for x in xs]
        y = jnp.pad(y, ((0, 0), (0, 0), (0, pad)),
                    constant_values=IGNORE_INDEX)

    tile = min(int(tile_hw), HWp)
    tile = max(128, (tile // 128) * 128)
    num_t = pl.cdiv(HWp, tile)
    needs_mask = (HWp != HW) or (HWp % tile != 0)

    kernel = _make_stats_kernel(nheads, C, tile, HW, needs_mask)

    logit_spec = pl.BlockSpec((1, C, tile), lambda b, t: (b, 0, t))
    label_spec = pl.BlockSpec((1, 1, tile), lambda b, t: (b, 0, t))
    out_spec = pl.BlockSpec((1, nheads, 5, C, 128),
                            lambda b, t: (b, 0, 0, 0, 0))

    stats = pl.pallas_call(
        kernel,
        out_shape=jax.ShapeDtypeStruct((B, nheads, 5, C, 128), jnp.float32),
        grid_spec=pltpu.PrefetchScalarGridSpec(
            num_scalar_prefetch=0,
            grid=(B, num_t),
            in_specs=[logit_spec] * nheads + [label_spec],
            out_specs=out_spec,
        ),
        compiler_params=pltpu.CompilerParams(
            dimension_semantics=("parallel", "arbitrary"),
            vmem_limit_bytes=32 * 1024 * 1024,
        ),
    )(*xs, y)
    return stats


def _losses_from_stats(stats, n_pixels, num_classes):
    """Tiny plain-JAX epilogue: cross-lane reduce + scalar loss math."""
    s = jnp.sum(stats, axis=(0, 4))                       # (nheads, 5, C)
    inter = s[:, _S_INTER]                                # (nheads, C)
    psum = s[:, _S_PSUM]
    cnt = s[:, _S_CNT]
    nll_sum = jnp.sum(s[:, _S_NLL], axis=-1)              # (nheads,)
    smooth_sum = jnp.sum(stats[:, :, _S_SMOOTH, 0, :], axis=(0, 2))

    # SoftCrossEntropy: mean over ALL pixels (ignored pixels are zeroed but
    # still counted in the denominator), label smoothing 0.05.
    sce = ((1.0 - SMOOTH_FACTOR) * nll_sum
           + (SMOOTH_FACTOR / num_classes) * smooth_sum) / n_pixels

    # DiceLoss (multiclass): per-class score over all valid pixels, classes
    # with no ground-truth pixels zeroed, mean over classes.
    card = psum + cnt
    score = (2.0 * inter + DICE_SMOOTH) / jnp.clip(card + DICE_SMOOTH,
                                                   DICE_EPS, None)
    dice = jnp.mean((1.0 - score) * (cnt > 0).astype(jnp.float32), axis=-1)
    return sce + dice                                     # (nheads,)


def afa_loss5(logits, labels, training=True, tile_hw=8192):
    """AFALoss5.forward: average JointLoss over 5 heads when training."""
    if training and isinstance(logits, (tuple, list)) and len(logits) == 5:
        heads = tuple(logits)
    else:
        heads = (logits,)
    B, C, H, W = heads[0].shape
    stats = _afa_stats(heads, labels, tile_hw=tile_hw)
    losses = _losses_from_stats(stats, B * H * W, C)
    return jnp.mean(losses)


# ---------------------------------------------------------------------------
# Pure-JAX reference (mirrors the PyTorch code) used as a silent sanity check.
# ---------------------------------------------------------------------------
def _joint_loss_ref(logits, labels):
    B, C, H, W = logits.shape
    lp = jax.nn.log_softmax(logits.astype(jnp.float32), axis=1)
    p = jnp.exp(lp)
    valid = (labels != IGNORE_INDEX)
    vf = valid.astype(jnp.float32)
    tgt = jnp.where(valid, labels, 0)
    onehot = jax.nn.one_hot(tgt, C, axis=1, dtype=jnp.float32) * vf[:, None]
    nll = -jnp.sum(lp * onehot, axis=1)
    smooth = -jnp.sum(lp, axis=1) * vf
    sce = (1.0 - SMOOTH_FACTOR) * jnp.mean(nll) + \
          (SMOOTH_FACTOR / C) * jnp.mean(smooth)
    pm = p * vf[:, None]
    inter = jnp.sum(pm * onehot, axis=(0, 2, 3))
    card = jnp.sum(pm + onehot, axis=(0, 2, 3))
    score = (2.0 * inter + DICE_SMOOTH) / jnp.clip(card + DICE_SMOOTH,
                                                   DICE_EPS, None)
    dl = (1.0 - score) * (jnp.sum(onehot, axis=(0, 2, 3)) > 0)
    return sce + jnp.mean(dl)


def _afa_ref(logits_list, labels):
    return sum(_joint_loss_ref(l, labels) for l in logits_list) / 5.0


if __name__ == "__main__":
    key = jax.random.PRNGKey(0)
    B, C, H, W = 2, 6, 16, 16

    k_logits, k_lbl, k_ign, k2 = jax.random.split(key, 4)
    heads = tuple(
        jax.random.normal(k, (B, C, H, W), dtype=jnp.float32)
        for k in jax.random.split(k_logits, 5)
    )
    labels = jax.random.randint(k_lbl, (B, H, W), 0, C, dtype=jnp.int32)
    ignore_mask = jax.random.bernoulli(k_ign, 0.1, (B, H, W))
    labels = jnp.where(ignore_mask, IGNORE_INDEX, labels)

    # 5-head training path
    loss = jax.block_until_ready(afa_loss5(heads, labels, training=True))
    ref = jax.block_until_ready(_afa_ref(heads, labels))
    assert jnp.allclose(loss, ref, rtol=1e-5, atol=1e-5), (loss, ref)

    # single-head eval path with a non-128-multiple spatial size (mask path)
    H2, W2 = 16, 18
    ka, kb, kc = jax.random.split(k2, 3)
    single = jax.random.normal(ka, (B, C, H2, W2), dtype=jnp.float32)
    labels2 = jax.random.randint(kb, (B, H2, W2), 0, C, dtype=jnp.int32)
    labels2 = jnp.where(jax.random.bernoulli(kc, 0.1, (B, H2, W2)),
                        IGNORE_INDEX, labels2)
    loss2 = jax.block_until_ready(afa_loss5(single, labels2, training=False))
    ref2 = jax.block_until_ready(_joint_loss_ref(single, labels2))
    assert jnp.allclose(loss2, ref2, rtol=1e-5, atol=1e-5), (loss2, ref2)

    print("KERNEL_OK")
</pallas_src>

<mosaic_0001>
module attributes {stable_mosaic.version = 11 : i64} {
  func.func @kernel(%arg0: i32, %arg1: i32, %arg2: memref<1x6x256xf32, #tpu.memory_space<vmem>>, %arg3: memref<1x6x256xf32, #tpu.memory_space<vmem>>, %arg4: memref<1x6x256xf32, #tpu.memory_space<vmem>>, %arg5: memref<1x6x256xf32, #tpu.memory_space<vmem>>, %arg6: memref<1x6x256xf32, #tpu.memory_space<vmem>>, %arg7: memref<1x1x256xi32, #tpu.memory_space<vmem>>, %arg8: memref<1x5x5x6x128xf32, #tpu.memory_space<vmem>>) attributes {dimension_semantics = [#tpu.dimension_semantics<parallel>, #tpu.dimension_semantics<arbitrary>], iteration_bounds = array<i64: 2, 1>, scalar_prefetch = 0 : i64, scratch_operands = 0 : i64, tpu.core_type = #tpu.core_type<tc>, window_params = [{transform_indices = @transform_0, window_bounds = array<i64: 1, 6, 256>}, {transform_indices = @transform_1, window_bounds = array<i64: 1, 6, 256>}, {transform_indices = @transform_2, window_bounds = array<i64: 1, 6, 256>}, {transform_indices = @transform_3, window_bounds = array<i64: 1, 6, 256>}, {transform_indices = @transform_4, window_bounds = array<i64: 1, 6, 256>}, {transform_indices = @transform_5, window_bounds = array<i64: 1, 1, 256>}, {transform_indices = @transform_6, window_bounds = array<i64: 1, 5, 5, 6, 128>}]} {
    %c0_i32 = arith.constant 0 : i32
    %0 = arith.cmpi eq, %arg1, %c0_i32 : i32
    %1 = arith.extui %0 : i1 to i32
    %c0_i32_0 = arith.constant 0 : i32
    %2 = arith.cmpi ne, %1, %c0_i32_0 : i32
    scf.if %2 {
      %cst_288 = arith.constant 0.000000e+00 : f32
      %359 = vector.broadcast %cst_288 : f32 to vector<1x5x5x6x128xf32>
      %c0_289 = arith.constant 0 : index
      %c0_290 = arith.constant 0 : index
      %c0_291 = arith.constant 0 : index
      %c0_292 = arith.constant 0 : index
      %c0_293 = arith.constant 0 : index
      %360 = vector.load %arg8[%c0_289, %c0_290, %c0_291, %c0_292, %c0_293] : memref<1x5x5x6x128xf32, #tpu.memory_space<vmem>>, vector<1x5x5x6x128xf32>
      tpu.vector_store %arg8[%c0_289, %c0_290, %c0_291, %c0_292, %c0_293], %359 {strides = array<i32>} : memref<1x5x5x6x128xf32, #tpu.memory_space<vmem>>, vector<1x5x5x6x128xf32>,
    } else {
    }
    %c0 = arith.constant 0 : index
    %c0_1 = arith.constant 0 : index
    %c0_2 = arith.constant 0 : index
    %3 = vector.load %arg7[%c0, %c0_1, %c0_2] : memref<1x1x256xi32, #tpu.memory_space<vmem>>, vector<1x1x256xi32>
    %4 = vector.shape_cast %3 : vector<1x1x256xi32> to vector<1x256xi32>
    %c255_i32 = arith.constant 255 : i32
    %5 = vector.broadcast %c255_i32 : i32 to vector<1x256xi32>
    %6 = arith.cmpi ne, %4, %5 : vector<1x256xi32>
    %7 = arith.extui %6 : vector<1x256xi1> to vector<1x256xi32>
    %8 = arith.sitofp %7 : vector<1x256xi32> to vector<1x256xf32>
    %9 = tpu.iota {dimensions = array<i32: 0>} : vector<6x256xi32>
    %10 = vector.broadcast %4 : vector<1x256xi32> to vector<6x256xi32>
    %11 = arith.cmpi eq, %9, %10 : vector<6x256xi32>
    %12 = vector.broadcast %6 : vector<1x256xi1> to vector<6x256xi1>
    %13 = arith.andi %11, %12 : vector<6x256xi1>
    %14 = arith.extui %13 : vector<6x256xi1> to vector<6x256xi32>
    %15 = arith.sitofp %14 : vector<6x256xi32> to vector<6x256xf32>
    %16 = vector.extract_strided_slice %15 {offsets = [0, 0], sizes = [6, 128], strides = [1, 1]} : vector<6x256xf32> to vector<6x128xf32>
    %17 = vector.extract_strided_slice %15 {offsets = [0, 128], sizes = [6, 128], strides = [1, 1]} : vector<6x256xf32> to vector<6x128xf32>
    %18 = arith.addf %16, %17 : vector<6x128xf32>
    %c0_3 = arith.constant 0 : index
    %c0_4 = arith.constant 0 : index
    %c0_5 = arith.constant 0 : index
    %19 = vector.load %arg2[%c0_3, %c0_4, %c0_5] : memref<1x6x256xf32, #tpu.memory_space<vmem>>, vector<1x6x256xf32>
    %20 = vector.shape_cast %19 : vector<1x6x256xf32> to vector<6x256xf32>
    %cst = arith.constant dense<0xFF800000> : vector<256xf32>
    %21 = vector.multi_reduction <maximumf>, %20, %cst [0] : vector<6x256xf32> to vector<256xf32>
    %22 = vector.shape_cast %21 : vector<256xf32> to vector<1x256xf32>
    %23 = vector.broadcast %22 : vector<1x256xf32> to vector<6x256xf32>
    %24 = arith.subf %20, %23 : vector<6x256xf32>
    %25 = math.exp %24 : vector<6x256xf32>
    %cst_6 = arith.constant dense<0.000000e+00> : vector<256xf32>
    %26 = vector.multi_reduction <add>, %25, %cst_6 [0] : vector<6x256xf32> to vector<256xf32>
    %27 = vector.shape_cast %26 : vector<256xf32> to vector<1x256xf32>
    %28 = math.log %27 : vector<1x256xf32>
    %cst_7 = arith.constant 1.000000e+00 : f32
    %29 = vector.broadcast %cst_7 : f32 to vector<1x256xf32>
    %30 = arith.divf %29, %27 : vector<1x256xf32>
    %31 = vector.broadcast %30 : vector<1x256xf32> to vector<6x256xf32>
    %32 = arith.mulf %25, %31 : vector<6x256xf32>
    %cst_8 = arith.constant dense<0.000000e+00> : vector<256xf32>
    %33 = vector.multi_reduction <add>, %24, %cst_8 [0] : vector<6x256xf32> to vector<256xf32>
    %34 = vector.shape_cast %33 : vector<256xf32> to vector<1x256xf32>
    %35 = arith.mulf %32, %15 : vector<6x256xf32>
    %36 = vector.broadcast %8 : vector<1x256xf32> to vector<6x256xf32>
    %37 = arith.mulf %32, %36 : vector<6x256xf32>
    %38 = vector.broadcast %28 : vector<1x256xf32> to vector<6x256xf32>
    %39 = arith.subf %38, %24 : vector<6x256xf32>
    %40 = arith.mulf %39, %15 : vector<6x256xf32>
    %cst_9 = arith.constant 6.000000e+00 : f32
    %41 = vector.broadcast %cst_9 : f32 to vector<1x256xf32>
    %42 = arith.mulf %41, %28 : vector<1x256xf32>
    %43 = arith.subf %42, %34 : vector<1x256xf32>
    %44 = arith.mulf %8, %43 : vector<1x256xf32>
    %c0_10 = arith.constant 0 : index
    %c0_11 = arith.constant 0 : index
    %c0_12 = arith.constant 0 : index
    %c0_13 = arith.constant 0 : index
    %c0_14 = arith.constant 0 : index
    %45 = vector.load %arg8[%c0_10, %c0_11, %c0_12, %c0_13, %c0_14] : memref<1x5x5x6x128xf32, #tpu.memory_space<vmem>>, vector<1x1x1x6x128xf32>
    %46 = vector.shape_cast %45 : vector<1x1x1x6x128xf32> to vector<6x128xf32>
    %47 = vector.extract_strided_slice %35 {offsets = [0, 0], sizes = [6, 128], strides = [1, 1]} : vector<6x256xf32> to vector<6x128xf32>
    %48 = vector.extract_strided_slice %35 {offsets = [0, 128], sizes = [6, 128], strides = [1, 1]} : vector<6x256xf32> to vector<6x128xf32>
    %49 = arith.addf %47, %48 : vector<6x128xf32>
    %50 = arith.addf %46, %49 : vector<6x128xf32>
    %c0_15 = arith.constant 0 : index
    %c0_16 = arith.constant 0 : index
    %c0_17 = arith.constant 0 : index
    %c0_18 = arith.constant 0 : index
    %c0_19 = arith.constant 0 : index
    %51 = vector.load %arg8[%c0_15, %c0_16, %c0_17, %c0_18, %c0_19] : memref<1x5x5x6x128xf32, #tpu.memory_space<vmem>>, vector<1x1x1x6x128xf32>
    %52 = vector.shape_cast %51 : vector<1x1x1x6x128xf32> to vector<6x128xf32>
    %53 = vector.shape_cast %50 : vector<6x128xf32> to vector<1x1x1x6x128xf32>
    tpu.vector_store %arg8[%c0_15, %c0_16, %c0_17, %c0_18, %c0_19], %53 {strides = array<i32>} : memref<1x5x5x6x128xf32, #tpu.memory_space<vmem>>, vector<1x1x1x6x128xf32>,
    %c0_20 = arith.constant 0 : index
    %c0_21 = arith.constant 0 : index
    %c1 = arith.constant 1 : index
    %c0_22 = arith.constant 0 : index
    %c0_23 = arith.constant 0 : index
    %54 = vector.load %arg8[%c0_20, %c0_21, %c1, %c0_22, %c0_23] : memref<1x5x5x6x128xf32, #tpu.memory_space<vmem>>, vector<1x1x1x6x128xf32>
    %55 = vector.shape_cast %54 : vector<1x1x1x6x128xf32> to vector<6x128xf32>
    %56 = vector.extract_strided_slice %37 {offsets = [0, 0], sizes = [6, 128], strides = [1, 1]} : vector<6x256xf32> to vector<6x128xf32>
    %57 = vector.extract_strided_slice %37 {offsets = [0, 128], sizes = [6, 128], strides = [1, 1]} : vector<6x256xf32> to vector<6x128xf32>
    %58 = arith.addf %56, %57 : vector<6x128xf32>
    %59 = arith.addf %55, %58 : vector<6x128xf32>
    %c0_24 = arith.constant 0 : index
    %c0_25 = arith.constant 0 : index
    %c1_26 = arith.constant 1 : index
    %c0_27 = arith.constant 0 : index
    %c0_28 = arith.constant 0 : index
    %60 = vector.load %arg8[%c0_24, %c0_25, %c1_26, %c0_27, %c0_28] : memref<1x5x5x6x128xf32, #tpu.memory_space<vmem>>, vector<1x1x1x6x128xf32>
    %61 = vector.shape_cast %60 : vector<1x1x1x6x128xf32> to vector<6x128xf32>
    %62 = vector.shape_cast %59 : vector<6x128xf32> to vector<1x1x1x6x128xf32>
    tpu.vector_store %arg8[%c0_24, %c0_25, %c1_26, %c0_27, %c0_28], %62 {strides = array<i32>} : memref<1x5x5x6x128xf32, #tpu.memory_space<vmem>>, vector<1x1x1x6x128xf32>,
    %c0_29 = arith.constant 0 : index
    %c0_30 = arith.constant 0 : index
    %c2 = arith.constant 2 : index
    %c0_31 = arith.constant 0 : index
    %c0_32 = arith.constant 0 : index
    %63 = vector.load %arg8[%c0_29, %c0_30, %c2, %c0_31, %c0_32] : memref<1x5x5x6x128xf32, #tpu.memory_space<vmem>>, vector<1x1x1x6x128xf32>
    %64 = vector.shape_cast %63 : vector<1x1x1x6x128xf32> to vector<6x128xf32>
    %65 = arith.addf %64, %18 : vector<6x128xf32>
    %c0_33 = arith.constant 0 : index
    %c0_34 = arith.constant 0 : index
    %c2_35 = arith.constant 2 : index
    %c0_36 = arith.constant 0 : index
    %c0_37 = arith.constant 0 : index
    %66 = vector.load %arg8[%c0_33, %c0_34, %c2_35, %c0_36, %c0_37] : memref<1x5x5x6x128xf32, #tpu.memory_space<vmem>>, vector<1x1x1x6x128xf32>
    %67 = vector.shape_cast %66 : vector<1x1x1x6x128xf32> to vector<6x128xf32>
    %68 = vector.shape_cast %65 : vector<6x128xf32> to vector<1x1x1x6x128xf32>
    tpu.vector_store %arg8[%c0_33, %c0_34, %c2_35, %c0_36, %c0_37], %68 {strides = array<i32>} : memref<1x5x5x6x128xf32, #tpu.memory_space<vmem>>, vector<1x1x1x6x128xf32>,
    %c0_38 = arith.constant 0 : index
    %c0_39 = arith.constant 0 : index
    %c3 = arith.constant 3 : index
    %c0_40 = arith.constant 0 : index
    %c0_41 = arith.constant 0 : index
    %69 = vector.load %arg8[%c0_38, %c0_39, %c3, %c0_40, %c0_41] : memref<1x5x5x6x128xf32, #tpu.memory_space<vmem>>, vector<1x1x1x6x128xf32>
    %70 = vector.shape_cast %69 : vector<1x1x1x6x128xf32> to vector<6x128xf32>
    %71 = vector.extract_strided_slice %40 {offsets = [0, 0], sizes = [6, 128], strides = [1, 1]} : vector<6x256xf32> to vector<6x128xf32>
    %72 = vector.extract_strided_slice %40 {offsets = [0, 128], sizes = [6, 128], strides = [1, 1]} : vector<6x256xf32> to vector<6x128xf32>
    %73 = arith.addf %71, %72 : vector<6x128xf32>
    %74 = arith.addf %70, %73 : vector<6x128xf32>
    %c0_42 = arith.constant 0 : index
    %c0_43 = arith.constant 0 : index
    %c3_44 = arith.constant 3 : index
    %c0_45 = arith.constant 0 : index
    %c0_46 = arith.constant 0 : index
    %75 = vector.load %arg8[%c0_42, %c0_43, %c3_44, %c0_45, %c0_46] : memref<1x5x5x6x128xf32, #tpu.memory_space<vmem>>, vector<1x1x1x6x128xf32>
    %76 = vector.shape_cast %75 : vector<1x1x1x6x128xf32> to vector<6x128xf32>
    %77 = vector.shape_cast %74 : vector<6x128xf32> to vector<1x1x1x6x128xf32>
    tpu.vector_store %arg8[%c0_42, %c0_43, %c3_44, %c0_45, %c0_46], %77 {strides = array<i32>} : memref<1x5x5x6x128xf32, #tpu.memory_space<vmem>>, vector<1x1x1x6x128xf32>,
    %c0_47 = arith.constant 0 : index
    %c0_48 = arith.constant 0 : index
    %c4 = arith.constant 4 : index
    %c0_49 = arith.constant 0 : index
    %c0_50 = arith.constant 0 : index
    %78 = vector.load %arg8[%c0_47, %c0_48, %c4, %c0_49, %c0_50] : memref<1x5x5x6x128xf32, #tpu.memory_space<vmem>>, vector<1x1x1x1x128xf32>
    %79 = vector.shape_cast %78 : vector<1x1x1x1x128xf32> to vector<1x128xf32>
    %80 = vector.extract_strided_slice %44 {offsets = [0, 0], sizes = [1, 128], strides = [1, 1]} : vector<1x256xf32> to vector<1x128xf32>
    %81 = vector.extract_strided_slice %44 {offsets = [0, 128], sizes = [1, 128], strides = [1, 1]} : vector<1x256xf32> to vector<1x128xf32>
    %82 = arith.addf %80, %81 : vector<1x128xf32>
    %83 = arith.addf %79, %82 : vector<1x128xf32>
    %c0_51 = arith.constant 0 : index
    %c0_52 = arith.constant 0 : index
    %c4_53 = arith.constant 4 : index
    %c0_54 = arith.constant 0 : index
    %c0_55 = arith.constant 0 : index
    %84 = vector.load %arg8[%c0_51, %c0_52, %c4_53, %c0_54, %c0_55] : memref<1x5x5x6x128xf32, #tpu.memory_space<vmem>>, vector<1x1x1x1x128xf32>
    %85 = vector.shape_cast %84 : vector<1x1x1x1x128xf32> to vector<1x128xf32>
    %86 = vector.shape_cast %83 : vector<1x128xf32> to vector<1x1x1x1x128xf32>
    tpu.vector_store %arg8[%c0_51, %c0_52, %c4_53, %c0_54, %c0_55], %86 {strides = array<i32>} : memref<1x5x5x6x128xf32, #tpu.memory_space<vmem>>, vector<1x1x1x1x128xf32>,
    %c0_56 = arith.constant 0 : index
    %c0_57 = arith.constant 0 : index
    %c0_58 = arith.constant 0 : index
    %87 = vector.load %arg3[%c0_56, %c0_57, %c0_58] : memref<1x6x256xf32, #tpu.memory_space<vmem>>, vector<1x6x256xf32>
    %88 = vector.shape_cast %87 : vector<1x6x256xf32> to vector<6x256xf32>
    %cst_59 = arith.constant dense<0xFF800000> : vector<256xf32>
    %89 = vector.multi_reduction <maximumf>, %88, %cst_59 [0] : vector<6x256xf32> to vector<256xf32>
    %90 = vector.shape_cast %89 : vector<256xf32> to vector<1x256xf32>
    %91 = vector.broadcast %90 : vector<1x256xf32> to vector<6x256xf32>
    %92 = arith.subf %88, %91 : vector<6x256xf32>
    %93 = math.exp %92 : vector<6x256xf32>
    %cst_60 = arith.constant dense<0.000000e+00> : vector<256xf32>
    %94 = vector.multi_reduction <add>, %93, %cst_60 [0] : vector<6x256xf32> to vector<256xf32>
    %95 = vector.shape_cast %94 : vector<256xf32> to vector<1x256xf32>
    %96 = math.log %95 : vector<1x256xf32>
    %cst_61 = arith.constant 1.000000e+00 : f32
    %97 = vector.broadcast %cst_61 : f32 to vector<1x256xf32>
    %98 = arith.divf %97, %95 : vector<1x256xf32>
    %99 = vector.broadcast %98 : vector<1x256xf32> to vector<6x256xf32>
    %100 = arith.mulf %93, %99 : vector<6x256xf32>
    %cst_62 = arith.constant dense<0.000000e+00> : vector<256xf32>
    %101 = vector.multi_reduction <add>, %92, %cst_62 [0] : vector<6x256xf32> to vector<256xf32>
    %102 = vector.shape_cast %101 : vector<256xf32> to vector<1x256xf32>
    %103 = arith.mulf %100, %15 : vector<6x256xf32>
    %104 = vector.broadcast %8 : vector<1x256xf32> to vector<6x256xf32>
    %105 = arith.mulf %100, %104 : vector<6x256xf32>
    %106 = vector.broadcast %96 : vector<1x256xf32> to vector<6x256xf32>
    %107 = arith.subf %106, %92 : vector<6x256xf32>
    %108 = arith.mulf %107, %15 : vector<6x256xf32>
    %cst_63 = arith.constant 6.000000e+00 : f32
    %109 = vector.broadcast %cst_63 : f32 to vector<1x256xf32>
    %110 = arith.mulf %109, %96 : vector<1x256xf32>
    %111 = arith.subf %110, %102 : vector<1x256xf32>
    %112 = arith.mulf %8, %111 : vector<1x256xf32>
    %c0_64 = arith.constant 0 : index
    %c1_65 = arith.constant 1 : index
    %c0_66 = arith.constant 0 : index
    %c0_67 = arith.constant 0 : index
    %c0_68 = arith.constant 0 : index
    %113 = vector.load %arg8[%c0_64, %c1_65, %c0_66, %c0_67, %c0_68] : memref<1x5x5x6x128xf32, #tpu.memory_space<vmem>>, vector<1x1x1x6x128xf32>
    %114 = vector.shape_cast %113 : vector<1x1x1x6x128xf32> to vector<6x128xf32>
    %115 = vector.extract_strided_slice %103 {offsets = [0, 0], sizes = [6, 128], strides = [1, 1]} : vector<6x256xf32> to vector<6x128xf32>
    %116 = vector.extract_strided_slice %103 {offsets = [0, 128], sizes = [6, 128], strides = [1, 1]} : vector<6x256xf32> to vector<6x128xf32>
    %117 = arith.addf %115, %116 : vector<6x128xf32>
    %118 = arith.addf %114, %117 : vector<6x128xf32>
    %c0_69 = arith.constant 0 : index
    %c1_70 = arith.constant 1 : index
    %c0_71 = arith.constant 0 : index
    %c0_72 = arith.constant 0 : index
    %c0_73 = arith.constant 0 : index
    %119 = vector.load %arg8[%c0_69, %c1_70, %c0_71, %c0_72, %c0_73] : memref<1x5x5x6x128xf32, #tpu.memory_space<vmem>>, vector<1x1x1x6x128xf32>
    %120 = vector.shape_cast %119 : vector<1x1x1x6x128xf32> to vector<6x128xf32>
    %121 = vector.shape_cast %118 : vector<6x128xf32> to vector<1x1x1x6x128xf32>
    tpu.vector_store %arg8[%c0_69, %c1_70, %c0_71, %c0_72, %c0_73], %121 {strides = array<i32>} : memref<1x5x5x6x128xf32, #tpu.memory_space<vmem>>, vector<1x1x1x6x128xf32>,
    %c0_74 = arith.constant 0 : index
    %c1_75 = arith.constant 1 : index
    %c1_76 = arith.constant 1 : index
    %c0_77 = arith.constant 0 : index
    %c0_78 = arith.constant 0 : index
    %122 = vector.load %arg8[%c0_74, %c1_75, %c1_76, %c0_77, %c0_78] : memref<1x5x5x6x128xf32, #tpu.memory_space<vmem>>, vector<1x1x1x6x128xf32>
    %123 = vector.shape_cast %122 : vector<1x1x1x6x128xf32> to vector<6x128xf32>
    %124 = vector.extract_strided_slice %105 {offsets = [0, 0], sizes = [6, 128], strides = [1, 1]} : vector<6x256xf32> to vector<6x128xf32>
    %125 = vector.extract_strided_slice %105 {offsets = [0, 128], sizes = [6, 128], strides = [1, 1]} : vector<6x256xf32> to vector<6x128xf32>
    %126 = arith.addf %124, %125 : vector<6x128xf32>
    %127 = arith.addf %123, %126 : vector<6x128xf32>
    %c0_79 = arith.constant 0 : index
    %c1_80 = arith.constant 1 : index
    %c1_81 = arith.constant 1 : index
    %c0_82 = arith.constant 0 : index
    %c0_83 = arith.constant 0 : index
    %128 = vector.load %arg8[%c0_79, %c1_80, %c1_81, %c0_82, %c0_83] : memref<1x5x5x6x128xf32, #tpu.memory_space<vmem>>, vector<1x1x1x6x128xf32>
    %129 = vector.shape_cast %128 : vector<1x1x1x6x128xf32> to vector<6x128xf32>
    %130 = vector.shape_cast %127 : vector<6x128xf32> to vector<1x1x1x6x128xf32>
    tpu.vector_store %arg8[%c0_79, %c1_80, %c1_81, %c0_82, %c0_83], %130 {strides = array<i32>} : memref<1x5x5x6x128xf32, #tpu.memory_space<vmem>>, vector<1x1x1x6x128xf32>,
    %c0_84 = arith.constant 0 : index
    %c1_85 = arith.constant 1 : index
    %c2_86 = arith.constant 2 : index
    %c0_87 = arith.constant 0 : index
    %c0_88 = arith.constant 0 : index
    %131 = vector.load %arg8[%c0_84, %c1_85, %c2_86, %c0_87, %c0_88] : memref<1x5x5x6x128xf32, #tpu.memory_space<vmem>>, vector<1x1x1x6x128xf32>
    %132 = vector.shape_cast %131 : vector<1x1x1x6x128xf32> to vector<6x128xf32>
    %133 = arith.addf %132, %18 : vector<6x128xf32>
    %c0_89 = arith.constant 0 : index
    %c1_90 = arith.constant 1 : index
    %c2_91 = arith.constant 2 : index
    %c0_92 = arith.constant 0 : index
    %c0_93 = arith.constant 0 : index
    %134 = vector.load %arg8[%c0_89, %c1_90, %c2_91, %c0_92, %c0_93] : memref<1x5x5x6x128xf32, #tpu.memory_space<vmem>>, vector<1x1x1x6x128xf32>
    %135 = vector.shape_cast %134 : vector<1x1x1x6x128xf32> to vector<6x128xf32>
    %136 = vector.shape_cast %133 : vector<6x128xf32> to vector<1x1x1x6x128xf32>
    tpu.vector_store %arg8[%c0_89, %c1_90, %c2_91, %c0_92, %c0_93], %136 {strides = array<i32>} : memref<1x5x5x6x128xf32, #tpu.memory_space<vmem>>, vector<1x1x1x6x128xf32>,
    %c0_94 = arith.constant 0 : index
    %c1_95 = arith.constant 1 : index
    %c3_96 = arith.constant 3 : index
    %c0_97 = arith.constant 0 : index
    %c0_98 = arith.constant 0 : index
    %137 = vector.load %arg8[%c0_94, %c1_95, %c3_96, %c0_97, %c0_98] : memref<1x5x5x6x128xf32, #tpu.memory_space<vmem>>, vector<1x1x1x6x128xf32>
    %138 = vector.shape_cast %137 : vector<1x1x1x6x128xf32> to vector<6x128xf32>
    %139 = vector.extract_strided_slice %108 {offsets = [0, 0], sizes = [6, 128], strides = [1, 1]} : vector<6x256xf32> to vector<6x128xf32>
    %140 = vector.extract_strided_slice %108 {offsets = [0, 128], sizes = [6, 128], strides = [1, 1]} : vector<6x256xf32> to vector<6x128xf32>
    %141 = arith.addf %139, %140 : vector<6x128xf32>
    %142 = arith.addf %138, %141 : vector<6x128xf32>
    %c0_99 = arith.constant 0 : index
    %c1_100 = arith.constant 1 : index
    %c3_101 = arith.constant 3 : index
    %c0_102 = arith.constant 0 : index
    %c0_103 = arith.constant 0 : index
    %143 = vector.load %arg8[%c0_99, %c1_100, %c3_101, %c0_102, %c0_103] : memref<1x5x5x6x128xf32, #tpu.memory_space<vmem>>, vector<1x1x1x6x128xf32>
    %144 = vector.shape_cast %143 : vector<1x1x1x6x128xf32> to vector<6x128xf32>
    %145 = vector.shape_cast %142 : vector<6x128xf32> to vector<1x1x1x6x128xf32>
    tpu.vector_store %arg8[%c0_99, %c1_100, %c3_101, %c0_102, %c0_103], %145 {strides = array<i32>} : memref<1x5x5x6x128xf32, #tpu.memory_space<vmem>>, vector<1x1x1x6x128xf32>,
    %c0_104 = arith.constant 0 : index
    %c1_105 = arith.constant 1 : index
    %c4_106 = arith.constant 4 : index
    %c0_107 = arith.constant 0 : index
    %c0_108 = arith.constant 0 : index
    %146 = vector.load %arg8[%c0_104, %c1_105, %c4_106, %c0_107, %c0_108] : memref<1x5x5x6x128xf32, #tpu.memory_space<vmem>>, vector<1x1x1x1x128xf32>
    %147 = vector.shape_cast %146 : vector<1x1x1x1x128xf32> to vector<1x128xf32>
    %148 = vector.extract_strided_slice %112 {offsets = [0, 0], sizes = [1, 128], strides = [1, 1]} : vector<1x256xf32> to vector<1x128xf32>
    %149 = vector.extract_strided_slice %112 {offsets = [0, 128], sizes = [1, 128], strides = [1, 1]} : vector<1x256xf32> to vector<1x128xf32>
    %150 = arith.addf %148, %149 : vector<1x128xf32>
    %151 = arith.addf %147, %150 : vector<1x128xf32>
    %c0_109 = arith.constant 0 : index
    %c1_110 = arith.constant 1 : index
    %c4_111 = arith.constant 4 : index
    %c0_112 = arith.constant 0 : index
    %c0_113 = arith.constant 0 : index
    %152 = vector.load %arg8[%c0_109, %c1_110, %c4_111, %c0_112, %c0_113] : memref<1x5x5x6x128xf32, #tpu.memory_space<vmem>>, vector<1x1x1x1x128xf32>
    %153 = vector.shape_cast %152 : vector<1x1x1x1x128xf32> to vector<1x128xf32>
    %154 = vector.shape_cast %151 : vector<1x128xf32> to vector<1x1x1x1x128xf32>
    tpu.vector_store %arg8[%c0_109, %c1_110, %c4_111, %c0_112, %c0_113], %154 {strides = array<i32>} : memref<1x5x5x6x128xf32, #tpu.memory_space<vmem>>, vector<1x1x1x1x128xf32>,
    %c0_114 = arith.constant 0 : index
    %c0_115 = arith.constant 0 : index
    %c0_116 = arith.constant 0 : index
    %155 = vector.load %arg4[%c0_114, %c0_115, %c0_116] : memref<1x6x256xf32, #tpu.memory_space<vmem>>, vector<1x6x256xf32>
    %156 = vector.shape_cast %155 : vector<1x6x256xf32> to vector<6x256xf32>
    %cst_117 = arith.constant dense<0xFF800000> : vector<256xf32>
    %157 = vector.multi_reduction <maximumf>, %156, %cst_117 [0] : vector<6x256xf32> to vector<256xf32>
    %158 = vector.shape_cast %157 : vector<256xf32> to vector<1x256xf32>
    %159 = vector.broadcast %158 : vector<1x256xf32> to vector<6x256xf32>
    %160 = arith.subf %156, %159 : vector<6x256xf32>
    %161 = math.exp %160 : vector<6x256xf32>
    %cst_118 = arith.constant dense<0.000000e+00> : vector<256xf32>
    %162 = vector.multi_reduction <add>, %161, %cst_118 [0] : vector<6x256xf32> to vector<256xf32>
    %163 = vector.shape_cast %162 : vector<256xf32> to vector<1x256xf32>
    %164 = math.log %163 : vector<1x256xf32>
    %cst_119 = arith.constant 1.000000e+00 : f32
    %165 = vector.broadcast %cst_119 : f32 to vector<1x256xf32>
    %166 = arith.divf %165, %163 : vector<1x256xf32>
    %167 = vector.broadcast %166 : vector<1x256xf32> to vector<6x256xf32>
    %168 = arith.mulf %161, %167 : vector<6x256xf32>
    %cst_120 = arith.constant dense<0.000000e+00> : vector<256xf32>
    %169 = vector.multi_reduction <add>, %160, %cst_120 [0] : vector<6x256xf32> to vector<256xf32>
    %170 = vector.shape_cast %169 : vector<256xf32> to vector<1x256xf32>
    %171 = arith.mulf %168, %15 : vector<6x256xf32>
    %172 = vector.broadcast %8 : vector<1x256xf32> to vector<6x256xf32>
    %173 = arith.mulf %168, %172 : vector<6x256xf32>
    %174 = vector.broadcast %164 : vector<1x256xf32> to vector<6x256xf32>
    %175 = arith.subf %174, %160 : vector<6x256xf32>
    %176 = arith.mulf %175, %15 : vector<6x256xf32>
    %cst_121 = arith.constant 6.000000e+00 : f32
    %177 = vector.broadcast %cst_121 : f32 to vector<1x256xf32>
    %178 = arith.mulf %177, %164 : vector<1x256xf32>
    %179 = arith.subf %178, %170 : vector<1x256xf32>
    %180 = arith.mulf %8, %179 : vector<1x256xf32>
    %c0_122 = arith.constant 0 : index
    %c2_123 = arith.constant 2 : index
    %c0_124 = arith.constant 0 : index
    %c0_125 = arith.constant 0 : index
    %c0_126 = arith.constant 0 : index
    %181 = vector.load %arg8[%c0_122, %c2_123, %c0_124, %c0_125, %c0_126] : memref<1x5x5x6x128xf32, #tpu.memory_space<vmem>>, vector<1x1x1x6x128xf32>
    %182 = vector.shape_cast %181 : vector<1x1x1x6x128xf32> to vector<6x128xf32>
    %183 = vector.extract_strided_slice %171 {offsets = [0, 0], sizes = [6, 128], strides = [1, 1]} : vector<6x256xf32> to vector<6x128xf32>
    %184 = vector.extract_strided_slice %171 {offsets = [0, 128], sizes = [6, 128], strides = [1, 1]} : vector<6x256xf32> to vector<6x128xf32>
    %185 = arith.addf %183, %184 : vector<6x128xf32>
    %186 = arith.addf %182, %185 : vector<6x128xf32>
    %c0_127 = arith.constant 0 : index
    %c2_128 = arith.constant 2 : index
    %c0_129 = arith.constant 0 : index
    %c0_130 = arith.constant 0 : index
    %c0_131 = arith.constant 0 : index
    %187 = vector.load %arg8[%c0_127, %c2_128, %c0_129, %c0_130, %c0_131] : memref<1x5x5x6x128xf32, #tpu.memory_space<vmem>>, vector<1x1x1x6x128xf32>
    %188 = vector.shape_cast %187 : vector<1x1x1x6x128xf32> to vector<6x128xf32>
    %189 = vector.shape_cast %186 : vector<6x128xf32> to vector<1x1x1x6x128xf32>
    tpu.vector_store %arg8[%c0_127, %c2_128, %c0_129, %c0_130, %c0_131], %189 {strides = array<i32>} : memref<1x5x5x6x128xf32, #tpu.memory_space<vmem>>, vector<1x1x1x6x128xf32>,
    %c0_132 = arith.constant 0 : index
    %c2_133 = arith.constant 2 : index
    %c1_134 = arith.constant 1 : index
    %c0_135 = arith.constant 0 : index
    %c0_136 = arith.constant 0 : index
    %190 = vector.load %arg8[%c0_132, %c2_133, %c1_134, %c0_135, %c0_136] : memref<1x5x5x6x128xf32, #tpu.memory_space<vmem>>, vector<1x1x1x6x128xf32>
    %191 = vector.shape_cast %190 : vector<1x1x1x6x128xf32> to vector<6x128xf32>
    %192 = vector.extract_strided_slice %173 {offsets = [0, 0], sizes = [6, 128], strides = [1, 1]} : vector<6x256xf32> to vector<6x128xf32>
    %193 = vector.extract_strided_slice %173 {offsets = [0, 128], sizes = [6, 128], strides = [1, 1]} : vector<6x256xf32> to vector<6x128xf32>
    %194 = arith.addf %192, %193 : vector<6x128xf32>
    %195 = arith.addf %191, %194 : vector<6x128xf32>
    %c0_137 = arith.constant 0 : index
    %c2_138 = arith.constant 2 : index
    %c1_139 = arith.constant 1 : index
    %c0_140 = arith.constant 0 : index
    %c0_141 = arith.constant 0 : index
    %196 = vector.load %arg8[%c0_137, %c2_138, %c1_139, %c0_140, %c0_141] : memref<1x5x5x6x128xf32, #tpu.memory_space<vmem>>, vector<1x1x1x6x128xf32>
    %197 = vector.shape_cast %196 : vector<1x1x1x6x128xf32> to vector<6x128xf32>
    %198 = vector.shape_cast %195 : vector<6x128xf32> to vector<1x1x1x6x128xf32>
    tpu.vector_store %arg8[%c0_137, %c2_138, %c1_139, %c0_140, %c0_141], %198 {strides = array<i32>} : memref<1x5x5x6x128xf32, #tpu.memory_space<vmem>>, vector<1x1x1x6x128xf32>,
    %c0_142 = arith.constant 0 : index
    %c2_143 = arith.constant 2 : index
    %c2_144 = arith.constant 2 : index
    %c0_145 = arith.constant 0 : index
    %c0_146 = arith.constant 0 : index
    %199 = vector.load %arg8[%c0_142, %c2_143, %c2_144, %c0_145, %c0_146] : memref<1x5x5x6x128xf32, #tpu.memory_space<vmem>>, vector<1x1x1x6x128xf32>
    %200 = vector.shape_cast %199 : vector<1x1x1x6x128xf32> to vector<6x128xf32>
    %201 = arith.addf %200, %18 : vector<6x128xf32>
    %c0_147 = arith.constant 0 : index
    %c2_148 = arith.constant 2 : index
    %c2_149 = arith.constant 2 : index
    %c0_150 = arith.constant 0 : index
    %c0_151 = arith.constant 0 : index
    %202 = vector.load %arg8[%c0_147, %c2_148, %c2_149, %c0_150, %c0_151] : memref<1x5x5x6x128xf32, #tpu.memory_space<vmem>>, vector<1x1x1x6x128xf32>
    %203 = vector.shape_cast %202 : vector<1x1x1x6x128xf32> to vector<6x128xf32>
    %204 = vector.shape_cast %201 : vector<6x128xf32> to vector<1x1x1x6x128xf32>
    tpu.vector_store %arg8[%c0_147, %c2_148, %c2_149, %c0_150, %c0_151], %204 {strides = array<i32>} : memref<1x5x5x6x128xf32, #tpu.memory_space<vmem>>, vector<1x1x1x6x128xf32>,
    %c0_152 = arith.constant 0 : index
    %c2_153 = arith.constant 2 : index
    %c3_154 = arith.constant 3 : index
    %c0_155 = arith.constant 0 : index
    %c0_156 = arith.constant 0 : index
    %205 = vector.load %arg8[%c0_152, %c2_153, %c3_154, %c0_155, %c0_156] : memref<1x5x5x6x128xf32, #tpu.memory_space<vmem>>, vector<1x1x1x6x128xf32>
    %206 = vector.shape_cast %205 : vector<1x1x1x6x128xf32> to vector<6x128xf32>
    %207 = vector.extract_strided_slice %176 {offsets = [0, 0], sizes = [6, 128], strides = [1, 1]} : vector<6x256xf32> to vector<6x128xf32>
    %208 = vector.extract_strided_slice %176 {offsets = [0, 128], sizes = [6, 128], strides = [1, 1]} : vector<6x256xf32> to vector<6x128xf32>
    %209 = arith.addf %207, %208 : vector<6x128xf32>
    %210 = arith.addf %206, %209 : vector<6x128xf32>
    %c0_157 = arith.constant 0 : index
    %c2_158 = arith.constant 2 : index
    %c3_159 = arith.constant 3 : index
    %c0_160 = arith.constant 0 : index
    %c0_161 = arith.constant 0 : index
    %211 = vector.load %arg8[%c0_157, %c2_158, %c3_159, %c0_160, %c0_161] : memref<1x5x5x6x128xf32, #tpu.memory_space<vmem>>, vector<1x1x1x6x128xf32>
    %212 = vector.shape_cast %211 : vector<1x1x1x6x128xf32> to vector<6x128xf32>
    %213 = vector.shape_cast %210 : vector<6x128xf32> to vector<1x1x1x6x128xf32>
    tpu.vector_store %arg8[%c0_157, %c2_158, %c3_159, %c0_160, %c0_161], %213 {strides = array<i32>} : memref<1x5x5x6x128xf32, #tpu.memory_space<vmem>>, vector<1x1x1x6x128xf32>,
    %c0_162 = arith.constant 0 : index
    %c2_163 = arith.constant 2 : index
    %c4_164 = arith.constant 4 : index
    %c0_165 = arith.constant 0 : index
    %c0_166 = arith.constant 0 : index
    %214 = vector.load %arg8[%c0_162, %c2_163, %c4_164, %c0_165, %c0_166] : memref<1x5x5x6x128xf32, #tpu.memory_space<vmem>>, vector<1x1x1x1x128xf32>
    %215 = vector.shape_cast %214 : vector<1x1x1x1x128xf32> to vector<1x128xf32>
    %216 = vector.extract_strided_slice %180 {offsets = [0, 0], sizes = [1, 128], strides = [1, 1]} : vector<1x256xf32> to vector<1x128xf32>
    %217 = vector.extract_strided_slice %180 {offsets = [0, 128], sizes = [1, 128], strides = [1, 1]} : vector<1x256xf32> to vector<1x128xf32>
    %218 = arith.addf %216, %217 : vector<1x128xf32>
    %219 = arith.addf %215, %218 : vector<1x128xf32>
    %c0_167 = arith.constant 0 : index
    %c2_168 = arith.constant 2 : index
    %c4_169 = arith.constant 4 : index
    %c0_170 = arith.constant 0 : index
    %c0_171 = arith.constant 0 : index
    %220 = vector.load %arg8[%c0_167, %c2_168, %c4_169, %c0_170, %c0_171] : memref<1x5x5x6x128xf32, #tpu.memory_space<vmem>>, vector<1x1x1x1x128xf32>
    %221 = vector.shape_cast %220 : vector<1x1x1x1x128xf32> to vector<1x128xf32>
    %222 = vector.shape_cast %219 : vector<1x128xf32> to vector<1x1x1x1x128xf32>
    tpu.vector_store %arg8[%c0_167, %c2_168, %c4_169, %c0_170, %c0_171], %222 {strides = array<i32>} : memref<1x5x5x6x128xf32, #tpu.memory_space<vmem>>, vector<1x1x1x1x128xf32>,
    %c0_172 = arith.constant 0 : index
    %c0_173 = arith.constant 0 : index
    %c0_174 = arith.constant 0 : index
    %223 = vector.load %arg5[%c0_172, %c0_173, %c0_174] : memref<1x6x256xf32, #tpu.memory_space<vmem>>, vector<1x6x256xf32>
    %224 = vector.shape_cast %223 : vector<1x6x256xf32> to vector<6x256xf32>
    %cst_175 = arith.constant dense<0xFF800000> : vector<256xf32>
    %225 = vector.multi_reduction <maximumf>, %224, %cst_175 [0] : vector<6x256xf32> to vector<256xf32>
    %226 = vector.shape_cast %225 : vector<256xf32> to vector<1x256xf32>
    %227 = vector.broadcast %226 : vector<1x256xf32> to vector<6x256xf32>
    %228 = arith.subf %224, %227 : vector<6x256xf32>
    %229 = math.exp %228 : vector<6x256xf32>
    %cst_176 = arith.constant dense<0.000000e+00> : vector<256xf32>
    %230 = vector.multi_reduction <add>, %229, %cst_176 [0] : vector<6x256xf32> to vector<256xf32>
    %231 = vector.shape_cast %230 : vector<256xf32> to vector<1x256xf32>
    %232 = math.log %231 : vector<1x256xf32>
    %cst_177 = arith.constant 1.000000e+00 : f32
    %233 = vector.broadcast %cst_177 : f32 to vector<1x256xf32>
    %234 = arith.divf %233, %231 : vector<1x256xf32>
    %235 = vector.broadcast %234 : vector<1x256xf32> to vector<6x256xf32>
    %236 = arith.mulf %229, %235 : vector<6x256xf32>
    %cst_178 = arith.constant dense<0.000000e+00> : vector<256xf32>
    %237 = vector.multi_reduction <add>, %228, %cst_178 [0] : vector<6x256xf32> to vector<256xf32>
    %238 = vector.shape_cast %237 : vector<256xf32> to vector<1x256xf32>
    %239 = arith.mulf %236, %15 : vector<6x256xf32>
    %240 = vector.broadcast %8 : vector<1x256xf32> to vector<6x256xf32>
    %241 = arith.mulf %236, %240 : vector<6x256xf32>
    %242 = vector.broadcast %232 : vector<1x256xf32> to vector<6x256xf32>
    %243 = arith.subf %242, %228 : vector<6x256xf32>
    %244 = arith.mulf %243, %15 : vector<6x256xf32>
    %cst_179 = arith.constant 6.000000e+00 : f32
    %245 = vector.broadcast %cst_179 : f32 to vector<1x256xf32>
    %246 = arith.mulf %245, %232 : vector<1x256xf32>
    %247 = arith.subf %246, %238 : vector<1x256xf32>
    %248 = arith.mulf %8, %247 : vector<1x256xf32>
    %c0_180 = arith.constant 0 : index
    %c3_181 = arith.constant 3 : index
    %c0_182 = arith.constant 0 : index
    %c0_183 = arith.constant 0 : index
    %c0_184 = arith.constant 0 : index
    %249 = vector.load %arg8[%c0_180, %c3_181, %c0_182, %c0_183, %c0_184] : memref<1x5x5x6x128xf32, #tpu.memory_space<vmem>>, vector<1x1x1x6x128xf32>
    %250 = vector.shape_cast %249 : vector<1x1x1x6x128xf32> to vector<6x128xf32>
    %251 = vector.extract_strided_slice %239 {offsets = [0, 0], sizes = [6, 128], strides = [1, 1]} : vector<6x256xf32> to vector<6x128xf32>
    %252 = vector.extract_strided_slice %239 {offsets = [0, 128], sizes = [6, 128], strides = [1, 1]} : vector<6x256xf32> to vector<6x128xf32>
    %253 = arith.addf %251, %252 : vector<6x128xf32>
    %254 = arith.addf %250, %253 : vector<6x128xf32>
    %c0_185 = arith.constant 0 : index
    %c3_186 = arith.constant 3 : index
    %c0_187 = arith.constant 0 : index
    %c0_188 = arith.constant 0 : index
    %c0_189 = arith.constant 0 : index
    %255 = vector.load %arg8[%c0_185, %c3_186, %c0_187, %c0_188, %c0_189] : memref<1x5x5x6x128xf32, #tpu.memory_space<vmem>>, vector<1x1x1x6x128xf32>
    %256 = vector.shape_cast %255 : vector<1x1x1x6x128xf32> to vector<6x128xf32>
    %257 = vector.shape_cast %254 : vector<6x128xf32> to vector<1x1x1x6x128xf32>
    tpu.vector_store %arg8[%c0_185, %c3_186, %c0_187, %c0_188, %c0_189], %257 {strides = array<i32>} : memref<1x5x5x6x128xf32, #tpu.memory_space<vmem>>, vector<1x1x1x6x128xf32>,
    %c0_190 = arith.constant 0 : index
    %c3_191 = arith.constant 3 : index
    %c1_192 = arith.constant 1 : index
    %c0_193 = arith.constant 0 : index
    %c0_194 = arith.constant 0 : index
    %258 = vector.load %arg8[%c0_190, %c3_191, %c1_192, %c0_193, %c0_194] : memref<1x5x5x6x128xf32, #tpu.memory_space<vmem>>, vector<1x1x1x6x128xf32>
    %259 = vector.shape_cast %258 : vector<1x1x1x6x128xf32> to vector<6x128xf32>
    %260 = vector.extract_strided_slice %241 {offsets = [0, 0], sizes = [6, 128], strides = [1, 1]} : vector<6x256xf32> to vector<6x128xf32>
    %261 = vector.extract_strided_slice %241 {offsets = [0, 128], sizes = [6, 128], strides = [1, 1]} : vector<6x256xf32> to vector<6x128xf32>
    %262 = arith.addf %260, %261 : vector<6x128xf32>
    %263 = arith.addf %259, %262 : vector<6x128xf32>
    %c0_195 = arith.constant 0 : index
    %c3_196 = arith.constant 3 : index
    %c1_197 = arith.constant 1 : index
    %c0_198 = arith.constant 0 : index
    %c0_199 = arith.constant 0 : index
    %264 = vector.load %arg8[%c0_195, %c3_196, %c1_197, %c0_198, %c0_199] : memref<1x5x5x6x128xf32, #tpu.memory_space<vmem>>, vector<1x1x1x6x128xf32>
    %265 = vector.shape_cast %264 : vector<1x1x1x6x128xf32> to vector<6x128xf32>
    %266 = vector.shape_cast %263 : vector<6x128xf32> to vector<1x1x1x6x128xf32>
    tpu.vector_store %arg8[%c0_195, %c3_196, %c1_197, %c0_198, %c0_199], %266 {strides = array<i32>} : memref<1x5x5x6x128xf32, #tpu.memory_space<vmem>>, vector<1x1x1x6x128xf32>,
    %c0_200 = arith.constant 0 : index
    %c3_201 = arith.constant 3 : index
    %c2_202 = arith.constant 2 : index
    %c0_203 = arith.constant 0 : index
    %c0_204 = arith.constant 0 : index
    %267 = vector.load %arg8[%c0_200, %c3_201, %c2_202, %c0_203, %c0_204] : memref<1x5x5x6x128xf32, #tpu.memory_space<vmem>>, vector<1x1x1x6x128xf32>
    %268 = vector.shape_cast %267 : vector<1x1x1x6x128xf32> to vector<6x128xf32>
    %269 = arith.addf %268, %18 : vector<6x128xf32>
    %c0_205 = arith.constant 0 : index
    %c3_206 = arith.constant 3 : index
    %c2_207 = arith.constant 2 : index
    %c0_208 = arith.constant 0 : index
    %c0_209 = arith.constant 0 : index
    %270 = vector.load %arg8[%c0_205, %c3_206, %c2_207, %c0_208, %c0_209] : memref<1x5x5x6x128xf32, #tpu.memory_space<vmem>>, vector<1x1x1x6x128xf32>
    %271 = vector.shape_cast %270 : vector<1x1x1x6x128xf32> to vector<6x128xf32>
    %272 = vector.shape_cast %269 : vector<6x128xf32> to vector<1x1x1x6x128xf32>
    tpu.vector_store %arg8[%c0_205, %c3_206, %c2_207, %c0_208, %c0_209], %272 {strides = array<i32>} : memref<1x5x5x6x128xf32, #tpu.memory_space<vmem>>, vector<1x1x1x6x128xf32>,
    %c0_210 = arith.constant 0 : index
    %c3_211 = arith.constant 3 : index
    %c3_212 = arith.constant 3 : index
    %c0_213 = arith.constant 0 : index
    %c0_214 = arith.constant 0 : index
    %273 = vector.load %arg8[%c0_210, %c3_211, %c3_212, %c0_213, %c0_214] : memref<1x5x5x6x128xf32, #tpu.memory_space<vmem>>, vector<1x1x1x6x128xf32>
    %274 = vector.shape_cast %273 : vector<1x1x1x6x128xf32> to vector<6x128xf32>
    %275 = vector.extract_strided_slice %244 {offsets = [0, 0], sizes = [6, 128], strides = [1, 1]} : vector<6x256xf32> to vector<6x128xf32>
    %276 = vector.extract_strided_slice %244 {offsets = [0, 128], sizes = [6, 128], strides = [1, 1]} : vector<6x256xf32> to vector<6x128xf32>
    %277 = arith.addf %275, %276 : vector<6x128xf32>
    %278 = arith.addf %274, %277 : vector<6x128xf32>
    %c0_215 = arith.constant 0 : index
    %c3_216 = arith.constant 3 : index
    %c3_217 = arith.constant 3 : index
    %c0_218 = arith.constant 0 : index
    %c0_219 = arith.constant 0 : index
    %279 = vector.load %arg8[%c0_215, %c3_216, %c3_217, %c0_218, %c0_219] : memref<1x5x5x6x128xf32, #tpu.memory_space<vmem>>, vector<1x1x1x6x128xf32>
    %280 = vector.shape_cast %279 : vector<1x1x1x6x128xf32> to vector<6x128xf32>
    %281 = vector.shape_cast %278 : vector<6x128xf32> to vector<1x1x1x6x128xf32>
    tpu.vector_store %arg8[%c0_215, %c3_216, %c3_217, %c0_218, %c0_219], %281 {strides = array<i32>} : memref<1x5x5x6x128xf32, #tpu.memory_space<vmem>>, vector<1x1x1x6x128xf32>,
    %c0_220 = arith.constant 0 : index
    %c3_221 = arith.constant 3 : index
    %c4_222 = arith.constant 4 : index
    %c0_223 = arith.constant 0 : index
    %c0_224 = arith.constant 0 : index
    %282 = vector.load %arg8[%c0_220, %c3_221, %c4_222, %c0_223, %c0_224] : memref<1x5x5x6x128xf32, #tpu.memory_space<vmem>>, vector<1x1x1x1x128xf32>
    %283 = vector.shape_cast %282 : vector<1x1x1x1x128xf32> to vector<1x128xf32>
    %284 = vector.extract_strided_slice %248 {offsets = [0, 0], sizes = [1, 128], strides = [1, 1]} : vector<1x256xf32> to vector<1x128xf32>
    %285 = vector.extract_strided_slice %248 {offsets = [0, 128], sizes = [1, 128], strides = [1, 1]} : vector<1x256xf32> to vector<1x128xf32>
    %286 = arith.addf %284, %285 : vector<1x128xf32>
    %287 = arith.addf %283, %286 : vector<1x128xf32>
    %c0_225 = arith.constant 0 : index
    %c3_226 = arith.constant 3 : index
    %c4_227 = arith.constant 4 : index
    %c0_228 = arith.constant 0 : index
    %c0_229 = arith.constant 0 : index
    %288 = vector.load %arg8[%c0_225, %c3_226, %c4_227, %c0_228, %c0_229] : memref<1x5x5x6x128xf32, #tpu.memory_space<vmem>>, vector<1x1x1x1x128xf32>
    %289 = vector.shape_cast %288 : vector<1x1x1x1x128xf32> to vector<1x128xf32>
    %290 = vector.shape_cast %287 : vector<1x128xf32> to vector<1x1x1x1x128xf32>
    tpu.vector_store %arg8[%c0_225, %c3_226, %c4_227, %c0_228, %c0_229], %290 {strides = array<i32>} : memref<1x5x5x6x128xf32, #tpu.memory_space<vmem>>, vector<1x1x1x1x128xf32>,
    %c0_230 = arith.constant 0 : index
    %c0_231 = arith.constant 0 : index
    %c0_232 = arith.constant 0 : index
    %291 = vector.load %arg6[%c0_230, %c0_231, %c0_232] : memref<1x6x256xf32, #tpu.memory_space<vmem>>, vector<1x6x256xf32>
    %292 = vector.shape_cast %291 : vector<1x6x256xf32> to vector<6x256xf32>
    %cst_233 = arith.constant dense<0xFF800000> : vector<256xf32>
    %293 = vector.multi_reduction <maximumf>, %292, %cst_233 [0] : vector<6x256xf32> to vector<256xf32>
    %294 = vector.shape_cast %293 : vector<256xf32> to vector<1x256xf32>
    %295 = vector.broadcast %294 : vector<1x256xf32> to vector<6x256xf32>
    %296 = arith.subf %292, %295 : vector<6x256xf32>
    %297 = math.exp %296 : vector<6x256xf32>
    %cst_234 = arith.constant dense<0.000000e+00> : vector<256xf32>
    %298 = vector.multi_reduction <add>, %297, %cst_234 [0] : vector<6x256xf32> to vector<256xf32>
    %299 = vector.shape_cast %298 : vector<256xf32> to vector<1x256xf32>
    %300 = math.log %299 : vector<1x256xf32>
    %cst_235 = arith.constant 1.000000e+00 : f32
    %301 = vector.broadcast %cst_235 : f32 to vector<1x256xf32>
    %302 = arith.divf %301, %299 : vector<1x256xf32>
    %303 = vector.broadcast %302 : vector<1x256xf32> to vector<6x256xf32>
    %304 = arith.mulf %297, %303 : vector<6x256xf32>
    %cst_236 = arith.constant dense<0.000000e+00> : vector<256xf32>
    %305 = vector.multi_reduction <add>, %296, %cst_236 [0] : vector<6x256xf32> to vector<256xf32>
    %306 = vector.shape_cast %305 : vector<256xf32> to vector<1x256xf32>
    %307 = arith.mulf %304, %15 : vector<6x256xf32>
    %308 = vector.broadcast %8 : vector<1x256xf32> to vector<6x256xf32>
    %309 = arith.mulf %304, %308 : vector<6x256xf32>
    %310 = vector.broadcast %300 : vector<1x256xf32> to vector<6x256xf32>
    %311 = arith.subf %310, %296 : vector<6x256xf32>
    %312 = arith.mulf %311, %15 : vector<6x256xf32>
    %cst_237 = arith.constant 6.000000e+00 : f32
    %313 = vector.broadcast %cst_237 : f32 to vector<1x256xf32>
    %314 = arith.mulf %313, %300 : vector<1x256xf32>
    %315 = arith.subf %314, %306 : vector<1x256xf32>
    %316 = arith.mulf %8, %315 : vector<1x256xf32>
    %c0_238 = arith.constant 0 : index
    %c4_239 = arith.constant 4 : index
    %c0_240 = arith.constant 0 : index
    %c0_241 = arith.constant 0 : index
    %c0_242 = arith.constant 0 : index
    %317 = vector.load %arg8[%c0_238, %c4_239, %c0_240, %c0_241, %c0_242] : memref<1x5x5x6x128xf32, #tpu.memory_space<vmem>>, vector<1x1x1x6x128xf32>
    %318 = vector.shape_cast %317 : vector<1x1x1x6x128xf32> to vector<6x128xf32>
    %319 = vector.extract_strided_slice %307 {offsets = [0, 0], sizes = [6, 128], strides = [1, 1]} : vector<6x256xf32> to vector<6x128xf32>
    %320 = vector.extract_strided_slice %307 {offsets = [0, 128], sizes = [6, 128], strides = [1, 1]} : vector<6x256xf32> to vector<6x128xf32>
    %321 = arith.addf %319, %320 : vector<6x128xf32>
    %322 = arith.addf %318, %321 : vector<6x128xf32>
    %c0_243 = arith.constant 0 : index
    %c4_244 = arith.constant 4 : index
    %c0_245 = arith.constant 0 : index
    %c0_246 = arith.constant 0 : index
    %c0_247 = arith.constant 0 : index
    %323 = vector.load %arg8[%c0_243, %c4_244, %c0_245, %c0_246, %c0_247] : memref<1x5x5x6x128xf32, #tpu.memory_space<vmem>>, vector<1x1x1x6x128xf32>
    %324 = vector.shape_cast %323 : vector<1x1x1x6x128xf32> to vector<6x128xf32>
    %325 = vector.shape_cast %322 : vector<6x128xf32> to vector<1x1x1x6x128xf32>
    tpu.vector_store %arg8[%c0_243, %c4_244, %c0_245, %c0_246, %c0_247], %325 {strides = array<i32>} : memref<1x5x5x6x128xf32, #tpu.memory_space<vmem>>, vector<1x1x1x6x128xf32>,
    %c0_248 = arith.constant 0 : index
    %c4_249 = arith.constant 4 : index
    %c1_250 = arith.constant 1 : index
    %c0_251 = arith.constant 0 : index
    %c0_252 = arith.constant 0 : index
    %326 = vector.load %arg8[%c0_248, %c4_249, %c1_250, %c0_251, %c0_252] : memref<1x5x5x6x128xf32, #tpu.memory_space<vmem>>, vector<1x1x1x6x128xf32>
    %327 = vector.shape_cast %326 : vector<1x1x1x6x128xf32> to vector<6x128xf32>
    %328 = vector.extract_strided_slice %309 {offsets = [0, 0], sizes = [6, 128], strides = [1, 1]} : vector<6x256xf32> to vector<6x128xf32>
    %329 = vector.extract_strided_slice %309 {offsets = [0, 128], sizes = [6, 128], strides = [1, 1]} : vector<6x256xf32> to vector<6x128xf32>
    %330 = arith.addf %328, %329 : vector<6x128xf32>
    %331 = arith.addf %327, %330 : vector<6x128xf32>
    %c0_253 = arith.constant 0 : index
    %c4_254 = arith.constant 4 : index
    %c1_255 = arith.constant 1 : index
    %c0_256 = arith.constant 0 : index
    %c0_257 = arith.constant 0 : index
    %332 = vector.load %arg8[%c0_253, %c4_254, %c1_255, %c0_256, %c0_257] : memref<1x5x5x6x128xf32, #tpu.memory_space<vmem>>, vector<1x1x1x6x128xf32>
    %333 = vector.shape_cast %332 : vector<1x1x1x6x128xf32> to vector<6x128xf32>
    %334 = vector.shape_cast %331 : vector<6x128xf32> to vector<1x1x1x6x128xf32>
    tpu.vector_store %arg8[%c0_253, %c4_254, %c1_255, %c0_256, %c0_257], %334 {strides = array<i32>} : memref<1x5x5x6x128xf32, #tpu.memory_space<vmem>>, vector<1x1x1x6x128xf32>,
    %c0_258 = arith.constant 0 : index
    %c4_259 = arith.constant 4 : index
    %c2_260 = arith.constant 2 : index
    %c0_261 = arith.constant 0 : index
    %c0_262 = arith.constant 0 : index
    %335 = vector.load %arg8[%c0_258, %c4_259, %c2_260, %c0_261, %c0_262] : memref<1x5x5x6x128xf32, #tpu.memory_space<vmem>>, vector<1x1x1x6x128xf32>
    %336 = vector.shape_cast %335 : vector<1x1x1x6x128xf32> to vector<6x128xf32>
    %337 = arith.addf %336, %18 : vector<6x128xf32>
    %c0_263 = arith.constant 0 : index
    %c4_264 = arith.constant 4 : index
    %c2_265 = arith.constant 2 : index
    %c0_266 = arith.constant 0 : index
    %c0_267 = arith.constant 0 : index
    %338 = vector.load %arg8[%c0_263, %c4_264, %c2_265, %c0_266, %c0_267] : memref<1x5x5x6x128xf32, #tpu.memory_space<vmem>>, vector<1x1x1x6x128xf32>
    %339 = vector.shape_cast %338 : vector<1x1x1x6x128xf32> to vector<6x128xf32>
    %340 = vector.shape_cast %337 : vector<6x128xf32> to vector<1x1x1x6x128xf32>
    tpu.vector_store %arg8[%c0_263, %c4_264, %c2_265, %c0_266, %c0_267], %340 {strides = array<i32>} : memref<1x5x5x6x128xf32, #tpu.memory_space<vmem>>, vector<1x1x1x6x128xf32>,
    %c0_268 = arith.constant 0 : index
    %c4_269 = arith.constant 4 : index
    %c3_270 = arith.constant 3 : index
    %c0_271 = arith.constant 0 : index
    %c0_272 = arith.constant 0 : index
    %341 = vector.load %arg8[%c0_268, %c4_269, %c3_270, %c0_271, %c0_272] : memref<1x5x5x6x128xf32, #tpu.memory_space<vmem>>, vector<1x1x1x6x128xf32>
    %342 = vector.shape_cast %341 : vector<1x1x1x6x128xf32> to vector<6x128xf32>
    %343 = vector.extract_strided_slice %312 {offsets = [0, 0], sizes = [6, 128], strides = [1, 1]} : vector<6x256xf32> to vector<6x128xf32>
    %344 = vector.extract_strided_slice %312 {offsets = [0, 128], sizes = [6, 128], strides = [1, 1]} : vector<6x256xf32> to vector<6x128xf32>
    %345 = arith.addf %343, %344 : vector<6x128xf32>
    %346 = arith.addf %342, %345 : vector<6x128xf32>
    %c0_273 = arith.constant 0 : index
    %c4_274 = arith.constant 4 : index
    %c3_275 = arith.constant 3 : index
    %c0_276 = arith.constant 0 : index
    %c0_277 = arith.constant 0 : index
    %347 = vector.load %arg8[%c0_273, %c4_274, %c3_275, %c0_276, %c0_277] : memref<1x5x5x6x128xf32, #tpu.memory_space<vmem>>, vector<1x1x1x6x128xf32>
    %348 = vector.shape_cast %347 : vector<1x1x1x6x128xf32> to vector<6x128xf32>
    %349 = vector.shape_cast %346 : vector<6x128xf32> to vector<1x1x1x6x128xf32>
    tpu.vector_store %arg8[%c0_273, %c4_274, %c3_275, %c0_276, %c0_277], %349 {strides = array<i32>} : memref<1x5x5x6x128xf32, #tpu.memory_space<vmem>>, vector<1x1x1x6x128xf32>,
    %c0_278 = arith.constant 0 : index
    %c4_279 = arith.constant 4 : index
    %c4_280 = arith.constant 4 : index
    %c0_281 = arith.constant 0 : index
    %c0_282 = arith.constant 0 : index
    %350 = vector.load %arg8[%c0_278, %c4_279, %c4_280, %c0_281, %c0_282] : memref<1x5x5x6x128xf32, #tpu.memory_space<vmem>>, vector<1x1x1x1x128xf32>
    %351 = vector.shape_cast %350 : vector<1x1x1x1x128xf32> to vector<1x128xf32>
    %352 = vector.extract_strided_slice %316 {offsets = [0, 0], sizes = [1, 128], strides = [1, 1]} : vector<1x256xf32> to vector<1x128xf32>
    %353 = vector.extract_strided_slice %316 {offsets = [0, 128], sizes = [1, 128], strides = [1, 1]} : vector<1x256xf32> to vector<1x128xf32>
    %354 = arith.addf %352, %353 : vector<1x128xf32>
    %355 = arith.addf %351, %354 : vector<1x128xf32>
    %c0_283 = arith.constant 0 : index
    %c4_284 = arith.constant 4 : index
    %c4_285 = arith.constant 4 : index
    %c0_286 = arith.constant 0 : index
    %c0_287 = arith.constant 0 : index
    %356 = vector.load %arg8[%c0_283, %c4_284, %c4_285, %c0_286, %c0_287] : memref<1x5x5x6x128xf32, #tpu.memory_space<vmem>>, vector<1x1x1x1x128xf32>
    %357 = vector.shape_cast %356 : vector<1x1x1x1x128xf32> to vector<1x128xf32>
    %358 = vector.shape_cast %355 : vector<1x128xf32> to vector<1x1x1x1x128xf32>
    tpu.vector_store %arg8[%c0_283, %c4_284, %c4_285, %c0_286, %c0_287], %358 {strides = array<i32>} : memref<1x5x5x6x128xf32, #tpu.memory_space<vmem>>, vector<1x1x1x1x128xf32>,
    return
  }
  func.func @transform_0(%arg0: i32, %arg1: i32) -> (i32, i32, i32) {
    %c0_i32 = arith.constant 0 : i32
    %c0_i32_0 = arith.constant 0 : i32
    return %arg0, %c0_i32, %arg1 : i32, i32, i32
  }
  func.func @transform_1(%arg0: i32, %arg1: i32) -> (i32, i32, i32) {
    %c0_i32 = arith.constant 0 : i32
    %c0_i32_0 = arith.constant 0 : i32
    return %arg0, %c0_i32, %arg1 : i32, i32, i32
  }
  func.func @transform_2(%arg0: i32, %arg1: i32) -> (i32, i32, i32) {
    %c0_i32 = arith.constant 0 : i32
    %c0_i32_0 = arith.constant 0 : i32
    return %arg0, %c0_i32, %arg1 : i32, i32, i32
  }
  func.func @transform_3(%arg0: i32, %arg1: i32) -> (i32, i32, i32) {
    %c0_i32 = arith.constant 0 : i32
    %c0_i32_0 = arith.constant 0 : i32
    return %arg0, %c0_i32, %arg1 : i32, i32, i32
  }
  func.func @transform_4(%arg0: i32, %arg1: i32) -> (i32, i32, i32) {
    %c0_i32 = arith.constant 0 : i32
    %c0_i32_0 = arith.constant 0 : i32
    return %arg0, %c0_i32, %arg1 : i32, i32, i32
  }
  func.func @transform_5(%arg0: i32, %arg1: i32) -> (i32, i32, i32) {
    %c0_i32 = arith.constant 0 : i32
    %c0_i32_0 = arith.constant 0 : i32
    return %arg0, %c0_i32, %arg1 : i32, i32, i32
  }
  func.func @transform_6(%arg0: i32, %arg1: i32) -> (i32, i32, i32, i32, i32) {
    %c0_i32 = arith.constant 0 : i32
    %c0_i32_0 = arith.constant 0 : i32
    %c0_i32_1 = arith.constant 0 : i32
    %c0_i32_2 = arith.constant 0 : i32
    %c0_i32_3 = arith.constant 0 : i32
    return %arg0, %c0_i32, %c0_i32_0, %c0_i32_1, %c0_i32_2 : i32, i32, i32, i32, i32
  }
}

</mosaic_0001>

<bundles_post_ra>
// kernel: tpu_custom_call.1
= control target key start
LH: loop header
LB: loop body
LE: loop exit
PB: predicated region body
PF: predicated region fallthrough
CT: control target
= control target key end

     0   :  { %s1501_s21 = smov 0   ;;  %s1503_s22 = smov 0   ;;  %s1973_s0 = inlined_call_operand.vmem [shape: f32[2,6,256], index: 0, kind: input, shape index: {}]   ;;  %s1974_s1 = inlined_call_operand.vmem [shape: f32[2,6,256], index: 1, kind: input, shape index: {}]   ;;  %s1975_s2 = inlined_call_operand.vmem [shape: f32[2,6,256], index: 2, kind: input, shape index: {}]   ;;  %s1976_s3 = inlined_call_operand.vmem [shape: f32[2,6,256], index: 3, kind: input, shape index: {}]   ;;  %s1977_s4 = inlined_call_operand.vmem [shape: f32[2,6,256], index: 4, kind: input, shape index: {}]   ;;  %s1978_s5 = inlined_call_operand.vmem [shape: s32[2,1,256], index: 5, kind: input, shape index: {}]   ;;  %s1979_s6 = inlined_call_operand.vmem [shape: f32[2,5,5,6,128], index: 6, kind: output, shape index: {}]  }
   0x1   :  { %s1505_s23 = smov 0  }
   0x2 LB: > { %s28_s24 = sadd.s32 1, %s1457_s22  ;;  %p1280_p0 = scmp.ge.s32.totalorder %s1461_s23, 1  ;;  %s1461_s23 = sphi %s1505_s23, %s16_s23   ;;  %s1457_s22 = sphi %s1503_s22, %s1985_s22   ;;  %s1453_s21 = sphi %s1501_s21, %s1984_s21  }
   0x3   : > { %p30_p1 = scmp.ge.s32.totalorder %s28_s24, 2  ;;  %p315_p2 = scmp.lt.s32.totalorder %s1461_s23, 3 }
   0x5   : > { %s1987_s24 = smov (%p30_p1, %s28_s24), 0  ;;  %p316_p3 = pnand %p1280_p0, %p315_p2 }
   0x6   : > { %p394_p4 = scmp.lt.s32.totalorder (!%p316_p3), %s1453_s21, 1 }
   0x7   : > { %319 = sbr.rel (%p316_p3) target bundleno = 168 (0xa8), region = 44 }
   0xc   : > { %v490_v0 = vlaneseq  ;;  %s1989_s21 = smov (!%p394_p4, %s1453_s21), 1  ;;  %vm521_vm0 = vcmask 1045504   ;;  %v1463_v6 = vmov 0.0   ;;  %v1464_v14 = vmov 0  }
   0xd   : > { %s1351_s25 = smul.u32 200, %s1989_s21  ;;  %s1521_s26 = sshll.u32 %s1989_s21, 4 }
   0xe   : > { %v1519_v1 = vshrl.u32 %v490_v0, 7  ;;  %s401_s29 = scalar_lea.vmem %s1973_s0, %s1521_s26  ;;  %s1291_s30 = sshll.u32 %s1989_s21, 1 }
   0xf   : > { %s1536_s9 = scalar_lea.vmem %s1979_s6, %s1351_s25  ;;  %s450_s12 = scalar_lea.vmem %s1978_s5, %s1291_s30  ;;  %v1541_v4 = vld [vmem:[%s401_s29] sm:$0x3f]  ;;  %v1543_v5 = vld [vmem:[%s401_s29 + $0x8] sm:$0x3f] }
  0x10   : > { %v1524_v2 = vsub.s32 0, %v1519_v1  ;;  %v1527_v3 = vsub.s32 1, %v1519_v1  ;;  %461 = vst [vmem:[%s1536_s9] sm:$0x3f] %v1463_v6  ;;  %462 = vst [vmem:[%s1536_s9 + $0x8] sm:$0x3f] %v1463_v6  ;;  %v522_v8 = vsel %vm521_vm0, %v1541_v4, -inf  ;;  %s411_s15 = scalar_lea.vmem %s1974_s1, %s1521_s26  ;;  %s421_s18 = scalar_lea.vmem %s1975_s2, %s1521_s26 }
  0x11   : > { %463 = vst [vmem:[%s1536_s9 + $0x10] sm:$0x3f] %v1463_v6  ;;  %464 = vst [vmem:[%s1536_s9 + $0x18] sm:$0x3f] %v1463_v6  ;;  %v1595_v7 = vld [vmem:[%s450_s12] sm:$0x3]  ;;  %s1665_s21 = scalar_lea.vmem %s1976_s3, %s1521_s26  ;;  %s441_s28 = scalar_lea.vmem %s1977_s4, %s1521_s26 }
  0x12   : > { %465 = vst [vmem:[%s1536_s9 + $0x20] sm:$0x3f] %v1463_v6  ;;  %466 = vst [vmem:[%s1536_s9 + $0x28] sm:$0x3f] %v1463_v6  ;;  %v529_v9 = vsel %vm521_vm0, %v1543_v5, -inf  ;;  %vm487_vm1 = vcmp.ne.s32.totalorder %v1595_v7, 255  ;;  %v495_v10 = vrot.slane %v1595_v7, %v1524_v2  ;;  %v499_v11 = vrot.slane %v1595_v7, %v1527_v3 }
  0x13   : > { %467 = vst [vmem:[%s1536_s9 + $0x30] sm:$0x3f] %v1463_v6  ;;  %468 = vst [vmem:[%s1536_s9 + $0x38] sm:$0x3f] %v1463_v6  ;;  %v523_v12 = vrot.slane %v522_v8, 4  ;;  %v488_v15 = vsel %vm487_vm1, 1, %v1464_v14 }
  0x14   : > { %469 = vst [vmem:[%s1536_s9 + $0x40] sm:$0x3f] %v1463_v6  ;;  %470 = vst [vmem:[%s1536_s9 + $0x48] sm:$0x3f] %v1463_v6  ;;  %v1614_v13 = vld [vmem:[%s411_s15] sm:$0x3f]  ;;  %vm1623_vm2 = vcmp.eq.s32.totalorder %v1519_v1, %v495_v10  ;;  %v505_v20 = vrot.slane %v488_v15, %v1524_v2  ;;  %v509_v21 = vrot.slane %v488_v15, %v1527_v3 }
  0x15   : > { %471 = vst [vmem:[%s1536_s9 + $0x50] sm:$0x3f] %v1463_v6  ;;  %472 = vst [vmem:[%s1536_s9 + $0x58] sm:$0x3f] %v1463_v6  ;;  %v530_v16 = vrot.slane %v529_v9, 4  ;;  %v650_v18 = vsel %vm521_vm0, %v1614_v13, -inf  ;;  %vm1632_vm3 = vcmp.eq.s32.totalorder %v1519_v1, %v499_v11  ;;  %v524_v24 = vmax.f32 %v522_v8, %v523_v12 }
  0x16   : > { %473 = vst [vmem:[%s1536_s9 + $0x60] sm:$0x3f] %v1463_v6  ;;  %474 = vst [vmem:[%s1536_s9 + $0x68] sm:$0x3f] %v1463_v6  ;;  %v1618_v17 = vld [vmem:[%s411_s15 + $0x8] sm:$0x3f] }
  0x17   : > { %475 = vst [vmem:[%s1536_s9 + $0x70] sm:$0x3f] %v1463_v6  ;;  %476 = vst [vmem:[%s1536_s9 + $0x78] sm:$0x3f] %v1463_v6  ;;  %v1629_v22 = vld [vmem:[%s421_s18] sm:$0x3f]  ;;  %v531_v25 = vmax.f32 %v529_v9, %v530_v16 }
  0x18   : > { %477 = vst [vmem:[%s1536_s9 + $0x80] sm:$0x3f] %v1463_v6  ;;  %478 = vst [vmem:[%s1536_s9 + $0x88] sm:$0x3f] %v1463_v6  ;;  %vm510_vm4 = vcmp.eq.s32.totalorder %v505_v20, 1  ;;  %vm511_vm5 = vcmp.eq.s32.totalorder %v509_v21, 1 }
  0x19   : > { %479 = vst [vmem:[%s1536_s9 + $0x90] sm:$0x3f] %v1463_v6  ;;  %480 = vst [vmem:[%s1536_s9 + $0x98] sm:$0x3f] %v1463_v6  ;;  %v651_v26 = vrot.slane %v650_v18, 4  ;;  %v657_v27 = vsel %vm521_vm0, %v1618_v17, -inf }
  0x1a   : > { %481 = vst [vmem:[%s1536_s9 + $0xa0] sm:$0x3f] %v1463_v6  ;;  %482 = vst [vmem:[%s1536_s9 + $0xa8] sm:$0x3f] %v1463_v6  ;;  %v525_v28 = vrot.slane %v524_v24, 2  ;;  %v532_v29 = vrot.slane %v531_v25, 2 }
  0x1b   : > { %483 = vst [vmem:[%s1536_s9 + $0xb0] sm:$0x3f] %v1463_v6  ;;  %484 = vst [vmem:[%s1536_s9 + $0xb8] sm:$0x3f] %v1463_v6  ;;  %v658_v30 = vrot.slane %v657_v27, 4  ;;  %v768_v32 = vsel %vm521_vm0, %v1629_v22, -inf  ;;  %v652_v34 = vmax.f32 %v650_v18, %v651_v26 }
  0x1c   : > { %485 = vst [vmem:[%s1536_s9 + $0xc0] sm:$0x3f] %v1463_v6  ;;  %vm512_vm6 = vmand %vm1623_vm2, %vm510_vm4  ;;  %v1640_v31 = vld [vmem:[%s421_s18 + $0x8] sm:$0x3f]  ;;  %v769_v35 = vrot.slane %v768_v32, 4  ;;  %v526_v37 = vmax.f32 %v524_v24, %v525_v28  ;;  %v533_v38 = vmax.f32 %v531_v25, %v532_v29 }
  0x1d   : > { %vm513_vm7 = vmand %vm1632_vm3, %vm511_vm5  ;;  %v1647_v33 = vsel %vm512_vm6, 1.0, %v1463_v6  ;;  %v1298_v39 = vld [vmem:[%s1536_s9 + $0x10] sm:$0x3f]  ;;  %v659_v40 = vmax.f32 %v657_v27, %v658_v30  ;;  %v653_v42 = vrot.slane %v652_v34, 2  ;;  %v775_v44 = vsel %vm521_vm0, %v1640_v31, -inf }
  0x1e   : > { %v1650_v36 = vsel %vm513_vm7, 1.0, %v1463_v6  ;;  %v770_v43 = vmax.f32 %v768_v32, %v769_v35  ;;  %v527_v45 = vrot.slane %v526_v37, 1  ;;  %v534_v46 = vrot.slane %v533_v38, 1  ;;  %v1308_v51 = vld [vmem:[%s1536_s9 + $0x38] sm:$0x3f] }
  0x1f   : > { %v1655_v41 = vadd.f32 %v1650_v36, %v1647_v33  ;;  %v660_v47 = vrot.slane %v659_v40, 2  ;;  %v776_v48 = vrot.slane %v775_v44, 4  ;;  %v654_v50 = vmax.f32 %v652_v34, %v653_v42  ;;  %v1318_v56 = vld [vmem:[%s1536_s9 + $0x60] sm:$0x3f] }
  0x20   : > { %v528_v52 = vmax.f32 %v526_v37, %v527_v45  ;;  %v535_v53 = vmax.f32 %v533_v38, %v534_v46  ;;  %v771_v58 = vrot.slane %v770_v43, 2  ;;  %v1679_v0 = vld [vmem:[%s1665_s21] sm:$0x3f]  ;;  %v1465_v34 = vmov 1966171168  }
  0x21   : > { %v633_v49 = vadd.f32 %v1298_v39, %v1655_v41  ;;  %v661_v54 = vmax.f32 %v659_v40, %v660_v47  ;;  %v751_v55 = vadd.f32 %v1308_v51, %v1655_v41  ;;  %v655_v57 = vrot.slane %v654_v50, 1 }
  0x22   : > { %v777_v59 = vmax.f32 %v775_v44, %v776_v48  ;;  %v869_v60 = vadd.f32 %v1318_v56, %v1655_v41  ;;  %v1672_v61 = vsub.f32 %v1541_v4, %v528_v52  ;;  %v1675_v62 = vsub.f32 %v1543_v5, %v535_v53 }
  0x23   : > { %1299 = vst [vmem:[%s1536_s9 + $0x10] sm:$0x3f] %v633_v49  ;;  %v662_v63 = vrot.slane %v661_v54, 1  ;;  %1309 = vst [vmem:[%s1536_s9 + $0x38] sm:$0x3f] %v751_v55  ;;  %v656_v8 = vmax.f32 %v654_v50, %v655_v57  ;;  %v772_v9 = vmax.f32 %v770_v43, %v771_v58  ;;  %v886_v18 = vsel %vm521_vm0, %v1679_v0, -inf }
  0x24   : > { %v778_v10 = vrot.slane %v777_v59, 2  ;;  %1319 = vst [vmem:[%s1536_s9 + $0x60] sm:$0x3f] %v869_v60  ;;  %v538_v11 = vmul.f32 1.442695, %v1672_v61  ;;  %v566_v14 = vsel %vm521_vm0, %v1672_v61, 0.0  ;;  %v607_v35 = vunpack.c.l.s4 %v1465_v34 }
  0x25   : > { %v540_v12 = vmul.f32 1.442695, %v1675_v62  ;;  %v573_v4 = vsel %vm521_vm0, %v1675_v62, 0.0  ;;  %v567_v5 = vrot.slane %v566_v14, 4  ;;  %v663_v15 = vmax.f32 %v661_v54, %v662_v63  ;;  %v1709_v43 = vld [vmem:[%s1665_s21 + $0x8] sm:$0x3f] }
  0x26   : > { %v1689_v16 = vsub.f32 %v1614_v13, %v656_v8  ;;  %1379 = vpow2.f32 %v538_v11  ;;  %v773_v19 = vrot.slane %v772_v9, 1  ;;  %v779_v20 = vmax.f32 %v777_v59, %v778_v10 }
  0x27   : > { %1381 = vpow2.f32 %v540_v12  ;;  %v574_v21 = vrot.slane %v573_v4, 4  ;;  %v1694_v23 = vsub.f32 %v1618_v17, %v663_v15  ;;  %v887_v27 = vrot.slane %v886_v18, 4 }
  0x28   : > { %v666_v24 = vmul.f32 1.442695, %v1689_v16  ;;  %v774_v25 = vmax.f32 %v772_v9, %v773_v19  ;;  %v780_v26 = vrot.slane %v779_v20, 1  ;;  %v568_v28 = vadd.f32 %v567_v5, %v566_v14 }
  0x29   : > { %v668_v13 = vmul.f32 1.442695, %v1694_v23  ;;  %v575_v32 = vadd.f32 %v574_v21, %v573_v4  ;;  %v888_v38 = vmax.f32 %v886_v18, %v887_v27  ;;  %v694_v40 = vsel %vm521_vm0, %v1689_v16, 0.0 }
  0x2a   : > { %1383 = vpow2.f32 %v666_v24  ;;  %v781_v29 = vmax.f32 %v779_v20, %v780_v26  ;;  %v1699_v30 = vsub.f32 %v1629_v22, %v774_v25  ;;  %v569_v39 = vrot.slane %v568_v28, 2  ;;  %v1328_v22 = vld [vmem:[%s1536_s9 + $0x88] sm:$0x3f] }
  0x2b   : > { %1385 = vpow2.f32 %v668_v13  ;;  %v1715_v44 = vsel %vm487_vm1, 1.0, %v1463_v6  ;;  %v608_v45 = vunpack.c.0.s8 %v607_v35  ;;  %v701_v46 = vsel %vm521_vm0, %v1694_v23, 0.0 }
  0x2c   : > { %v1702_v17 = vsub.f32 %v1640_v31, %v781_v29  ;;  %v784_v37 = vmul.f32 1.442695, %v1699_v30  ;;  %v576_v31 = vrot.slane %v575_v32, 2  ;;  %v695_v47 = vrot.slane %v694_v40, 4 }
  0x2d   : > { %v812_v48 = vsel %vm521_vm0, %v1699_v30, 0.0  ;;  %v889_v49 = vrot.slane %v888_v38, 2  ;;  %v1721_v50 = vadd.f32 %v569_v39, %v568_v28  ;;  %v893_v51 = vsel %vm521_vm0, %v1709_v43, -inf }
  0x2e   : > { %1387 = vpow2.f32 %v784_v37  ;;  %v786_v42 = vmul.f32 1.442695, %v1702_v17  ;;  %v987_v6 = vadd.f32 %v1328_v22, %v1655_v41  ;;  %v702_v7 = vrot.slane %v701_v46, 4 }
  0x2f   : > { %v890_v52 = vmax.f32 %v888_v38, %v889_v49  ;;  %v894_v53 = vrot.slane %v893_v51, 4  ;;  %v1730_v55 = vrot.slane %v1715_v44, %v1524_v2  ;;  %v1732_v56 = vadd.f32 %v576_v31, %v575_v32  ;;  %v1779_v31 = vld [vmem:[%s441_s28] sm:$0x3f] }
  0x30   : > { %1389 = vpow2.f32 %v786_v42  ;;  %v1735_v57 = vsub.s32 %v608_v45, %v1519_v1  ;;  %v813_v58 = vrot.slane %v812_v48, 4  ;;  %1329 = vst [vmem:[%s1536_s9 + $0x88] sm:$0x3f] %v987_v6  ;;  %v1744_v63 = vrot.slane %v1715_v44, %v1527_v3 }
  0x31   : > { %v1746_v8 = vadd.f32 %v695_v47, %v694_v40  ;;  %v891_v2 = vrot.slane %v890_v52, 1  ;;  %v571_v1 = vrot.slane %v1721_v50, 1  ;;  %v895_v11 = vmax.f32 %v893_v51, %v894_v53 }
  0x32   : > { %v1751_v14 = vadd.f32 %v702_v7, %v701_v46  ;;  %v819_v4 = vsel %vm521_vm0, %v1702_v17, 0.0  ;;  %v578_v18 = vrot.slane %v1732_v56, 1  ;;  %v1758_v19 = vadd.f32 %v813_v58, %v812_v48 }
  0x33   : > { %v1726_v54 = vpop.eup %1379  ;;  %v892_v5 = vmax.f32 %v890_v52, %v891_v2  ;;  %v896_v20 = vrot.slane %v895_v11, 2  ;;  %v697_v26 = vrot.slane %v1746_v8, 2  ;;  %v820_v32 = vrot.slane %v819_v4, 4  ;;  %v1785_v52 = vld [vmem:[%s441_s28 + $0x8] sm:$0x3f] }
  0x34   : > { %v1738_v59 = vpop.eup %1381  ;;  %v542_v60 = vsel %vm521_vm0, %v1726_v54, 0.0  ;;  %v704_v37 = vrot.slane %v1751_v14, 2  ;;  %v815_v42 = vrot.slane %v1758_v19, 2  ;;  %v1004_v2 = vsel %vm521_vm0, %v1779_v31, -inf }
  0x35   : > { %v543_v9 = vrot.slane %v542_v60, 4  ;;  %v549_v10 = vsel %vm521_vm0, %v1738_v59, 0.0  ;;  %v1766_v27 = vsub.f32 %v1679_v0, %v892_v5  ;;  %v897_v22 = vmax.f32 %v895_v11, %v896_v20 }
  0x36   : > { %v550_v12 = vrot.slane %v549_v10, 4  ;;  %v821_v7 = vadd.f32 %v820_v32, %v819_v4  ;;  %v1011_v4 = vsel %vm521_vm0, %v1785_v52, -inf  ;;  %v1005_v32 = vrot.slane %v1004_v2, 4 }
  0x37   : > { %v1755_v3 = vpop.eup %1383  ;;  %v544_v15 = vadd.f32 %v543_v9, %v542_v60  ;;  %v902_v38 = vmul.f32 1.442695, %v1766_v27  ;;  %v898_v20 = vrot.slane %v897_v22, 1 }
  0x38   : > { %v1760_v21 = vpop.eup %1385  ;;  %v551_v24 = vadd.f32 %v550_v12, %v549_v10  ;;  %v670_v25 = vsel %vm521_vm0, %v1755_v3, 0.0 }
  0x39   : > { %v545_v28 = vrot.slane %v544_v15, 2  ;;  %v671_v13 = vrot.slane %v670_v25, 4  ;;  %v677_v29 = vsel %vm521_vm0, %v1760_v21, 0.0  ;;  %1391 = vpow2.f32 %v902_v38 }
  0x3a   : > { %v552_v34 = vrot.slane %v551_v24, 2  ;;  %v678_v35 = vrot.slane %v677_v29, 4 }
  0x3b   : > { %v1776_v39 = vpop.eup %1387  ;;  %v546_v0 = vadd.f32 %v545_v28, %v544_v15  ;;  %v672_v40 = vadd.f32 %v671_v13, %v670_v25 }
  0x3c   : > { %v553_v45 = vadd.f32 %v552_v34, %v551_v24  ;;  %v679_v46 = vadd.f32 %v678_v35, %v677_v29  ;;  %v788_v47 = vsel %vm521_vm0, %v1776_v39, 0.0  ;;  %v822_v29 = vrot.slane %v821_v7, 2 }
  0x3d   : > { %v1783_v48 = vpop.eup %1389  ;;  %v547_v49 = vrot.slane %v546_v0, 1  ;;  %v673_v51 = vrot.slane %v672_v40, 2  ;;  %v789_v6 = vrot.slane %v788_v47, 4 }
  0x3e   : > { %v554_v53 = vrot.slane %v553_v45, 1  ;;  %v680_v58 = vrot.slane %v679_v46, 2  ;;  %v795_v60 = vsel %vm521_vm0, %v1783_v48, 0.0 }
  0x3f   : > { %v548_v9 = vadd.f32 %v547_v49, %v546_v0  ;;  %v674_v10 = vadd.f32 %v673_v51, %v672_v40  ;;  %v790_v11 = vadd.f32 %v789_v6, %v788_v47  ;;  %v796_v12 = vrot.slane %v795_v60, 4 }
  0x40   : > { %v555_v5 = vadd.f32 %v554_v53, %v553_v45  ;;  %v681_v15 = vadd.f32 %v680_v58, %v679_v46  ;;  %v698_v40 = vadd.f32 %v697_v26, %v1746_v8  ;;  %v899_v45 = vmax.f32 %v897_v22, %v898_v20  ;;  %v1338_v58 = vld [vmem:[%s1536_s9 + $0xb0] sm:$0x3f] }
  0x41   : > { %1393 = vrcp.f32 %v548_v9  ;;  %v675_v24 = vrot.slane %v674_v10, 1  ;;  %v791_v25 = vrot.slane %v790_v11, 2  ;;  %v797_v28 = vadd.f32 %v796_v12, %v795_v60 }
  0x42   : > { %1395 = vrcp.f32 %v555_v5  ;;  %v682_v13 = vrot.slane %v681_v15, 1  ;;  %v705_v46 = vadd.f32 %v704_v37, %v1751_v14  ;;  %v816_v51 = vadd.f32 %v815_v42, %v1758_v19 }
  0x43   : > { %1397 = vlog2.f32 %v548_v9  ;;  %v676_v34 = vadd.f32 %v675_v24, %v674_v10  ;;  %v792_v35 = vadd.f32 %v791_v25, %v790_v11  ;;  %v798_v38 = vrot.slane %v797_v28, 2 }
  0x44   : > { %1399 = vlog2.f32 %v555_v5  ;;  %v683_v0 = vadd.f32 %v682_v13, %v681_v15  ;;  %v1006_v6 = vmax.f32 %v1004_v2, %v1005_v32  ;;  %v1012_v53 = vrot.slane %v1011_v4, 4 }
  0x45   : > { %1401 = vrcp.f32 %v676_v34  ;;  %v793_v47 = vrot.slane %v792_v35, 1  ;;  %v799_v49 = vadd.f32 %v798_v38, %v797_v28  ;;  %v823_v10 = vadd.f32 %v822_v29, %v821_v7 }
  0x46   : > { %1403 = vrcp.f32 %v683_v0  ;;  %v1798_v11 = vsub.f32 %v1709_v43, %v899_v45  ;;  %v1007_v8 = vrot.slane %v1006_v6, 2  ;;  %v1013_v26 = vmax.f32 %v1011_v4, %v1012_v53  ;;  %v1800_v14 = vpop.eup %1391 }
  0x47   : > { %1405 = vlog2.f32 %v676_v34  ;;  %v794_v60 = vadd.f32 %v793_v47, %v792_v35  ;;  %v800_v9 = vrot.slane %v799_v49, 1  ;;  %v699_v37 = vrot.slane %v698_v40, 1 }
  0x48   : > { %1407 = vlog2.f32 %v683_v0  ;;  %v1105_v19 = vadd.f32 %v1338_v58, %v1655_v41  ;;  %v706_v42 = vrot.slane %v705_v46, 1  ;;  %v906_v2 = vsel %vm521_vm0, %v1800_v14, 0.0 }
  0x49   : > { %v801_v22 = vadd.f32 %v800_v9, %v799_v49  ;;  %1409 = vrcp.f32 %v794_v60  ;;  %v1008_v12 = vmax.f32 %v1006_v6, %v1007_v8  ;;  %v1014_v7 = vrot.slane %v1013_v26, 2  ;;  %v1296_v8 = vld [vmem:[%s1536_s9 + $0x8] sm:$0x3f] }
  0x4a   : > { %1411 = vlog2.f32 %v794_v60  ;;  %v817_v5 = vrot.slane %v816_v51, 1  ;;  %v824_v43 = vrot.slane %v823_v10, 1  ;;  %v907_v15 = vrot.slane %v906_v2, 4  ;;  %1339 = vst [vmem:[%s1536_s9 + $0xb0] sm:$0x3f] %v1105_v19 }
  0x4b   : > { %1413 = vrcp.f32 %v801_v22  ;;  %v904_v20 = vmul.f32 1.442695, %v1798_v11  ;;  %v1009_v4 = vrot.slane %v1008_v12, 1  ;;  %v1015_v24 = vmax.f32 %v1013_v26, %v1014_v7 }
  0x4c   : > { %v572_v41 = vadd.f32 %v571_v1, %v1721_v50  ;;  %v579_v25 = vadd.f32 %v578_v18, %v1732_v56  ;;  %1415 = vlog2.f32 %v801_v22  ;;  %v908_v28 = vadd.f32 %v907_v15, %v906_v2 }
  0x4d   : > { %v1813_v29 = vadd.f32 %v699_v37, %v698_v40  ;;  %v1815_v32 = vadd.f32 %v706_v42, %v705_v46  ;;  %v1010_v34 = vmax.f32 %v1008_v12, %v1009_v4  ;;  %v1016_v35 = vrot.slane %v1015_v24, 1 }
  0x4e   : > { %v1394_v13 = vpop.eup %1393  ;;  %v1818_v45 = vadd.f32 %v817_v5, %v816_v51  ;;  %v1820_v47 = vadd.f32 %v824_v43, %v823_v10  ;;  %v909_v50 = vrot.slane %v908_v28, 2  ;;  %1417 = vpow2.f32 %v904_v20 }
  0x4f   : > { %v1396_v38 = vpop.eup %1395  ;;  %v564_v0 = vmul.f32 %v1394_v13, %v1726_v54  ;;  %v1017_v18 = vmax.f32 %v1015_v24, %v1016_v35  ;;  %v1824_v40 = vsub.f32 %v1779_v31, %v1010_v34  ;;  %v622_v31 = vld [vmem:[%s1536_s9] sm:$0x3f] }
  0x50   : > { %v1398_v1 = vpop.eup %1397  ;;  %v565_v56 = vmul.f32 %v1396_v38, %v1738_v59  ;;  %v1828_v6 = vadd.f32 %v909_v50, %v908_v28 }
  0x51   : > { %v1400_v46 = vpop.eup %1399  ;;  %v580_v49 = vmul.f32 %v1647_v33, %v564_v0  ;;  %v593_v54 = vmul.f32 %v1730_v55, %v564_v0  ;;  %v557_v51 = vmul.f32 0.6931472, %v1398_v1  ;;  %v1833_v9 = vsub.f32 %v1785_v52, %v1017_v18  ;;  %v1304_v1 = vld [vmem:[%s1536_s9 + $0x28] sm:$0x3f] }
  0x52   : > { %v1402_v53 = vpop.eup %1401  ;;  %v581_v58 = vmul.f32 %v1650_v36, %v565_v56  ;;  %v594_v60 = vmul.f32 %v1744_v63, %v565_v56  ;;  %v559_v59 = vmul.f32 0.6931472, %v1400_v46  ;;  %v911_v19 = vrot.slane %v1828_v6, 1  ;;  %v1306_v56 = vld [vmem:[%s1536_s9 + $0x30] sm:$0x3f] }
  0x53   : > { %v1404_v10 = vpop.eup %1403  ;;  %v595_v26 = vsub.f32 %v557_v51, %v1672_v61  ;;  %v599_v37 = vmul.f32 6.0, %v557_v51  ;;  %v692_v22 = vmul.f32 %v1402_v53, %v1755_v3 }
  0x54   : > { %v1406_v42 = vpop.eup %1405  ;;  %v623_v2 = vadd.f32 %v581_v58, %v580_v49  ;;  %v628_v12 = vadd.f32 %v594_v60, %v593_v54  ;;  %v596_v7 = vsub.f32 %v559_v59, %v1675_v62  ;;  %v600_v5 = vmul.f32 6.0, %v559_v59  ;;  %v1300_v62 = vld [vmem:[%s1536_s9 + $0x18] sm:$0x3f] }
  0x55   : > { %v1408_v43 = vpop.eup %1407  ;;  %v597_v52 = vmul.f32 %v1647_v33, %v595_v26  ;;  %v601_v15 = vsub.f32 %v599_v37, %v572_v41  ;;  %v693_v61 = vmul.f32 %v1404_v10, %v1760_v21  ;;  %v708_v20 = vmul.f32 %v1647_v33, %v692_v22 }
  0x56   : > { %v1410_v3 = vpop.eup %1409  ;;  %v624_v4 = vadd.f32 %v623_v2, %v622_v31  ;;  %v629_v24 = vadd.f32 %v1296_v8, %v628_v12  ;;  %v598_v28 = vmul.f32 %v1650_v36, %v596_v7  ;;  %v602_v13 = vsub.f32 %v600_v5, %v579_v25 }
  0x57   : > { %v709_v34 = vmul.f32 %v1650_v36, %v693_v61  ;;  %v710_v35 = vmul.f32 %v692_v22, %v1730_v55  ;;  %v711_v38 = vmul.f32 %v693_v61, %v1744_v63  ;;  %v685_v41 = vmul.f32 0.6931472, %v1406_v42  ;;  %v1412_v0 = vpop.eup %1411 }
  0x58   : > { %625 = vst [vmem:[%s1536_s9] sm:$0x3f] %v624_v4  ;;  %1297 = vst [vmem:[%s1536_s9 + $0x8] sm:$0x3f] %v629_v24  ;;  %v637_v21 = vadd.f32 %v598_v28, %v597_v52  ;;  %v605_v50 = vcombine.low %v601_v15, %v602_v13  ;;  %v687_v18 = vmul.f32 0.6931472, %v1408_v43  ;;  %v810_v46 = vmul.f32 %v1410_v3, %v1776_v39  ;;  %v1414_v25 = vpop.eup %1413 }
  0x59   : > { %v741_v49 = vadd.f32 %v709_v34, %v708_v20  ;;  %v746_v54 = vadd.f32 %v711_v38, %v710_v35  ;;  %v712_v51 = vsub.f32 %v685_v41, %v1689_v16  ;;  %v716_v53 = vmul.f32 6.0, %v685_v41  ;;  %v1416_v58 = vpop.eup %1415  ;;  %v1316_v35 = vld [vmem:[%s1536_s9 + $0x58] sm:$0x3f]  ;;  %v1302_v38 = vld [vmem:[%s1536_s9 + $0x20] sm:$0x1] }
  0x5a   : > { %v638_v60 = vadd.f32 %v1300_v62, %v637_v21  ;;  %v612_v59 = vrot.slane %v605_v50, %v1735_v57  ;;  %v713_v10 = vsub.f32 %v687_v18, %v1694_v23  ;;  %v717_v31 = vmul.f32 6.0, %v687_v18  ;;  %v1310_v23 = vld [vmem:[%s1536_s9 + $0x40] sm:$0x3f] }
  0x5b   : > { %v742_v8 = vadd.f32 %v1304_v1, %v741_v49  ;;  %v747_v26 = vadd.f32 %v1306_v56, %v746_v54  ;;  %v714_v39 = vmul.f32 %v1647_v33, %v712_v51  ;;  %v718_v37 = vsub.f32 %v716_v53, %v1813_v29  ;;  %v1864_v12 = vpop.eup %1417  ;;  %v1320_v56 = vld [vmem:[%s1536_s9 + $0x68] sm:$0x3f] }
  0x5c   : > { %1301 = vst [vmem:[%s1536_s9 + $0x18] sm:$0x3f] %v638_v60  ;;  %v619_v16 = vrot.slane %v612_v59, %v1735_v57  ;;  %v715_v22 = vmul.f32 %v1650_v36, %v713_v10  ;;  %v719_v42 = vsub.f32 %v717_v31, %v1815_v32  ;;  %v811_v2 = vmul.f32 %v1414_v25, %v1783_v48  ;;  %v1314_v48 = vld [vmem:[%s1536_s9 + $0x50] sm:$0x3f] }
  0x5d   : > { %1305 = vst [vmem:[%s1536_s9 + $0x28] sm:$0x3f] %v742_v8  ;;  %1307 = vst [vmem:[%s1536_s9 + $0x30] sm:$0x3f] %v747_v26  ;;  %v826_v7 = vmul.f32 %v1647_v33, %v810_v46  ;;  %v828_v5 = vmul.f32 %v810_v46, %v1730_v55  ;;  %v803_v29 = vmul.f32 0.6931472, %v1412_v0  ;;  %v912_v31 = vadd.f32 %v911_v19, %v1828_v6 }
  0x5e   : > { %v805_v43 = vmul.f32 0.6931472, %v1416_v58  ;;  %v621_v52 = vmul.f32 %v1715_v44, %v619_v16  ;;  %v755_v15 = vadd.f32 %v715_v22, %v714_v39  ;;  %v722_v61 = vcombine.low %v718_v37, %v719_v42  ;;  %v1312_v8 = vld [vmem:[%s1536_s9 + $0x48] sm:$0x1] }
  0x5f   : > { %v827_v32 = vmul.f32 %v1650_v36, %v811_v2  ;;  %v829_v20 = vmul.f32 %v811_v2, %v1744_v63  ;;  %v830_v3 = vsub.f32 %v803_v29, %v1699_v30  ;;  %v834_v24 = vmul.f32 6.0, %v803_v29 }
  0x60   : > { %v831_v4 = vsub.f32 %v805_v43, %v1702_v17  ;;  %v643_v28 = vrot.slane %v621_v52, 1  ;;  %v756_v13 = vadd.f32 %v1310_v23, %v755_v15  ;;  %v729_v62 = vrot.slane %v722_v61, %v1735_v57 }
  0x61   : > { %v859_v34 = vadd.f32 %v827_v32, %v826_v7  ;;  %v864_v41 = vadd.f32 %v829_v20, %v828_v5  ;;  %v832_v0 = vmul.f32 %v1647_v33, %v830_v3  ;;  %v835_v50 = vmul.f32 6.0, %v805_v43 }
  0x62   : > { %v833_v21 = vmul.f32 %v1650_v36, %v831_v4  ;;  %v645_v30 = vadd.f32 %v643_v28, %v621_v52  ;;  %1311 = vst [vmem:[%s1536_s9 + $0x40] sm:$0x3f] %v756_v13  ;;  %v736_v17 = vrot.slane %v729_v62, %v1735_v57  ;;  %v836_v18 = vsub.f32 %v834_v24, %v1818_v45  ;;  %v1322_v52 = vld [vmem:[%s1536_s9 + $0x70] sm:$0x1] }
  0x63   : > { %v860_v1 = vadd.f32 %v1314_v48, %v859_v34  ;;  %v865_v46 = vadd.f32 %v1316_v35, %v864_v41  ;;  %v837_v49 = vsub.f32 %v835_v50, %v1820_v47  ;;  %v913_v53 = vsel %vm521_vm0, %v1864_v12, 0.0 }
  0x64   : > { %v873_v25 = vadd.f32 %v833_v21, %v832_v0  ;;  %v646_v54 = vadd.f32 %v1302_v38, %v645_v30  ;;  %v738_v51 = vmul.f32 %v1715_v44, %v736_v17  ;;  %v1020_v58 = vmul.f32 1.442695, %v1824_v40 }
  0x65   : > { %1315 = vst [vmem:[%s1536_s9 + $0x50] sm:$0x3f] %v860_v1  ;;  %1317 = vst [vmem:[%s1536_s9 + $0x58] sm:$0x3f] %v865_v46  ;;  %v840_v59 = vcombine.low %v836_v18, %v837_v49  ;;  %v914_v10 = vrot.slane %v913_v53, 4  ;;  %v930_v37 = vsel %vm521_vm0, %v1766_v27, 0.0 }
  0x66   : > { %v874_v60 = vadd.f32 %v1320_v56, %v873_v25  ;;  %1303 = vst [vmem:[%s1536_s9 + $0x20] sm:$0x1] %v646_v54  ;;  %v761_v45 = vrot.slane %v738_v51, 1  ;;  %v1022_v47 = vmul.f32 1.442695, %v1833_v9  ;;  %1419 = vpow2.f32 %v1020_v58 }
  0x67   : > { %v847_v26 = vrot.slane %v840_v59, %v1735_v57  ;;  %v915_v39 = vadd.f32 %v914_v10, %v913_v53  ;;  %v937_v6 = vsel %vm521_vm0, %v1798_v11, 0.0  ;;  %v931_v2 = vrot.slane %v930_v37, 4 }
  0x68   : > { %1321 = vst [vmem:[%s1536_s9 + $0x68] sm:$0x3f] %v874_v60  ;;  %v763_v16 = vadd.f32 %v761_v45, %v738_v51  ;;  %1421 = vpow2.f32 %v1022_v47  ;;  %v938_v5 = vrot.slane %v937_v6, 4  ;;  %v1048_v17 = vsel %vm521_vm0, %v1824_v40, 0.0 }
  0x69   : > { %v854_v22 = vrot.slane %v847_v26, %v1735_v57  ;;  %v916_v42 = vrot.slane %v915_v39, 2  ;;  %1423 = vlog2.f32 %v912_v31  ;;  %v932_v15 = vadd.f32 %v931_v2, %v930_v37 }
  0x6a   : > { %v764_v19 = vadd.f32 %v1312_v8, %v763_v16  ;;  %1425 = vrcp.f32 %v912_v31  ;;  %v939_v48 = vadd.f32 %v938_v5, %v937_v6  ;;  %v1055_v49 = vsel %vm521_vm0, %v1833_v9, 0.0  ;;  %v1326_v5 = vld [vmem:[%s1536_s9 + $0x80] sm:$0x3f] }
  0x6b   : > { %v856_v23 = vmul.f32 %v1715_v44, %v854_v22  ;;  %v917_v7 = vadd.f32 %v916_v42, %v915_v39  ;;  %v933_v3 = vrot.slane %v932_v15, 2  ;;  %v1049_v53 = vrot.slane %v1048_v17, 4 }
  0x6c   : > { %1313 = vst [vmem:[%s1536_s9 + $0x48] sm:$0x1] %v764_v19  ;;  %v940_v24 = vrot.slane %v939_v48, 2  ;;  %v1056_v47 = vrot.slane %v1055_v49, 4 }
  0x6d   : > { %v879_v29 = vrot.slane %v856_v23, 1  ;;  %v918_v43 = vrot.slane %v917_v7, 1  ;;  %v934_v62 = vadd.f32 %v933_v3, %v932_v15 }
  0x6e   : > { %v941_v21 = vadd.f32 %v940_v24, %v939_v48  ;;  %v1330_v24 = vld [vmem:[%s1536_s9 + $0x90] sm:$0x3f] }
  0x6f   : > { %v881_v61 = vadd.f32 %v879_v29, %v856_v23  ;;  %v919_v32 = vadd.f32 %v918_v43, %v917_v7  ;;  %v935_v56 = vrot.slane %v934_v62, 1  ;;  %v1324_v7 = vld [vmem:[%s1536_s9 + $0x78] sm:$0x3f] }
  0x70   : > { %v942_v54 = vrot.slane %v941_v21, 1 }
  0x71   : > { %v882_v20 = vadd.f32 %v1322_v52, %v881_v61  ;;  %1427 = vrcp.f32 %v919_v32  ;;  %v936_v45 = vadd.f32 %v935_v56, %v934_v62  ;;  %v1057_v61 = vadd.f32 %v1056_v47, %v1055_v49  ;;  %v1332_v56 = vld [vmem:[%s1536_s9 + $0x98] sm:$0x1] }
  0x72   : > { %1429 = vlog2.f32 %v919_v32  ;;  %v943_v22 = vadd.f32 %v942_v54, %v941_v21 }
  0x73   : > { %1323 = vst [vmem:[%s1536_s9 + $0x70] sm:$0x1] %v882_v20  ;;  %v1910_v4 = vpop.eup %1419 }
  0x74   : > { %v1024_v13 = vsel %vm521_vm0, %v1910_v4, 0.0 }
  0x75   : > { %v1912_v28 = vpop.eup %1421  ;;  %v1025_v34 = vrot.slane %v1024_v13, 4 }
  0x76   : > { %v1031_v35 = vsel %vm521_vm0, %v1912_v28, 0.0  ;;  %v1424_v38 = vpop.eup %1423 }
  0x77   : > { %v1032_v41 = vrot.slane %v1031_v35, 4  ;;  %v1426_v0 = vpop.eup %1425  ;;  %v1026_v50 = vadd.f32 %v1025_v34, %v1024_v13  ;;  %v921_v1 = vmul.f32 0.6931472, %v1424_v38  ;;  %v1058_v34 = vrot.slane %v1057_v61, 2 }
  0x78   : > { %v928_v46 = vmul.f32 %v1426_v0, %v1800_v14 }
  0x79   : > { %v1033_v30 = vadd.f32 %v1032_v41, %v1031_v35  ;;  %v1027_v18 = vrot.slane %v1026_v50, 2  ;;  %v948_v58 = vsub.f32 %v921_v1, %v1766_v27  ;;  %v952_v10 = vmul.f32 6.0, %v921_v1 }
  0x7a   : > { %v944_v26 = vmul.f32 %v1647_v33, %v928_v46  ;;  %v946_v39 = vmul.f32 %v928_v46, %v1730_v55  ;;  %v1050_v27 = vadd.f32 %v1049_v53, %v1048_v17  ;;  %v1059_v21 = vadd.f32 %v1058_v34, %v1057_v61 }
  0x7b   : > { %v1034_v25 = vrot.slane %v1033_v30, 2  ;;  %v1028_v51 = vadd.f32 %v1027_v18, %v1026_v50  ;;  %v950_v2 = vmul.f32 %v1647_v33, %v948_v58  ;;  %v954_v43 = vsub.f32 %v952_v10, %v936_v45 }
  0x7c   : > { %v1051_v13 = vrot.slane %v1050_v27, 2  ;;  %v1060_v18 = vrot.slane %v1059_v21, 1 }
  0x7d   : > { %v1035_v60 = vadd.f32 %v1034_v25, %v1033_v30  ;;  %v1029_v31 = vrot.slane %v1028_v51, 1 }
  0x7e   : > { %v1428_v59 = vpop.eup %1427  ;;  %v1052_v41 = vadd.f32 %v1051_v13, %v1050_v27 }
  0x7f   : > { %v1430_v8 = vpop.eup %1429  ;;  %v929_v14 = vmul.f32 %v1428_v59, %v1864_v12  ;;  %v1036_v37 = vrot.slane %v1035_v60, 1  ;;  %v1030_v42 = vadd.f32 %v1029_v31, %v1028_v51 }
  0x80   : > { %v923_v16 = vmul.f32 0.6931472, %v1430_v8  ;;  %v1053_v30 = vrot.slane %v1052_v41, 1 }
  0x81   : > { %v945_v6 = vmul.f32 %v1650_v36, %v929_v14  ;;  %v947_v19 = vmul.f32 %v929_v14, %v1744_v63  ;;  %v1037_v23 = vadd.f32 %v1036_v37, %v1035_v60  ;;  %1431 = vrcp.f32 %v1030_v42 }
  0x82   : > { %v949_v12 = vsub.f32 %v923_v16, %v1798_v11  ;;  %v953_v29 = vmul.f32 6.0, %v923_v16  ;;  %v1054_v53 = vadd.f32 %v1053_v30, %v1052_v41  ;;  %v1061_v14 = vadd.f32 %v1060_v18, %v1059_v21 }
  0x83   : > { %v977_v52 = vadd.f32 %v945_v6, %v944_v26  ;;  %v982_v15 = vadd.f32 %v947_v19, %v946_v39  ;;  %1433 = vrcp.f32 %v1037_v23 }
  0x84   : > { %v951_v32 = vmul.f32 %v1650_v36, %v949_v12  ;;  %v955_v48 = vsub.f32 %v953_v29, %v943_v22  ;;  %1435 = vlog2.f32 %v1030_v42 }
  0x85   : > { %v978_v20 = vadd.f32 %v1324_v7, %v977_v52  ;;  %v983_v3 = vadd.f32 %v1326_v5, %v982_v15  ;;  %1437 = vlog2.f32 %v1037_v23  ;;  %v1340_v23 = vld [vmem:[%s1536_s9 + $0xb8] sm:$0x3f] }
  0x86   : > { %v991_v11 = vadd.f32 %v951_v32, %v950_v2  ;;  %v958_v62 = vcombine.low %v954_v43, %v955_v48  ;;  %v1342_v43 = vld [vmem:[%s1536_s9 + $0xc0] sm:$0x1] }
  0x87   : > { %1325 = vst [vmem:[%s1536_s9 + $0x78] sm:$0x3f] %v978_v20  ;;  %1327 = vst [vmem:[%s1536_s9 + $0x80] sm:$0x3f] %v983_v3 }
  0x88   : > { %v992_v35 = vadd.f32 %v1330_v24, %v991_v11  ;;  %v965_v38 = vrot.slane %v958_v62, %v1735_v57 }
  0x8a   : > { %1331 = vst [vmem:[%s1536_s9 + $0x90] sm:$0x3f] %v992_v35  ;;  %v972_v0 = vrot.slane %v965_v38, %v1735_v57 }
  0x8c   : > { %v974_v50 = vmul.f32 %v1715_v44, %v972_v0 }
  0x8e   : > { %v997_v17 = vrot.slane %v974_v50, 1  ;;  %v1432_v1 = vpop.eup %1431 }
  0x8f   : > { %v1046_v49 = vmul.f32 %v1432_v1, %v1910_v4  ;;  %v1334_v4 = vld [vmem:[%s1536_s9 + $0xa0] sm:$0x3f] }
  0x90   : > { %v1434_v46 = vpop.eup %1433  ;;  %v999_v25 = vadd.f32 %v997_v17, %v974_v50 }
  0x91   : > { %v1436_v54 = vpop.eup %1435  ;;  %v1047_v51 = vmul.f32 %v1434_v46, %v1912_v28  ;;  %v1062_v59 = vmul.f32 %v1647_v33, %v1046_v49  ;;  %v1064_v10 = vmul.f32 %v1046_v49, %v1730_v55  ;;  %v1336_v28 = vld [vmem:[%s1536_s9 + $0xa8] sm:$0x3f] }
  0x92   : > { %v1438_v58 = vpop.eup %1437  ;;  %v1000_v60 = vadd.f32 %v1332_v56, %v999_v25  ;;  %v1039_v45 = vmul.f32 0.6931472, %v1436_v54 }
  0x93   : > { %v1063_v31 = vmul.f32 %v1650_v36, %v1047_v51  ;;  %v1065_v47 = vmul.f32 %v1047_v51, %v1744_v63  ;;  %v1041_v8 = vmul.f32 0.6931472, %v1438_v58 }
  0x94   : > { %1333 = vst [vmem:[%s1536_s9 + $0x98] sm:$0x1] %v1000_v60  ;;  %v1066_v26 = vsub.f32 %v1039_v45, %v1824_v40  ;;  %v1070_v39 = vmul.f32 6.0, %v1039_v45 }
  0x95   : > { %v1095_v37 = vadd.f32 %v1063_v31, %v1062_v59  ;;  %v1100_v16 = vadd.f32 %v1065_v47, %v1064_v10  ;;  %v1067_v55 = vsub.f32 %v1041_v8, %v1833_v9  ;;  %v1071_v22 = vmul.f32 6.0, %v1041_v8 }
  0x96   : > { %v1068_v42 = vmul.f32 %v1647_v33, %v1066_v26  ;;  %v1072_v63 = vsub.f32 %v1070_v39, %v1054_v53 }
  0x97   : > { %v1096_v27 = vadd.f32 %v1334_v4, %v1095_v37  ;;  %v1101_v6 = vadd.f32 %v1336_v28, %v1100_v16  ;;  %v1069_v19 = vmul.f32 %v1650_v36, %v1067_v55  ;;  %v1073_v2 = vsub.f32 %v1071_v22, %v1061_v14 }
  0x99   : > { %1335 = vst [vmem:[%s1536_s9 + $0xa0] sm:$0x3f] %v1096_v27  ;;  %1337 = vst [vmem:[%s1536_s9 + $0xa8] sm:$0x3f] %v1101_v6  ;;  %v1109_v40 = vadd.f32 %v1069_v19, %v1068_v42  ;;  %v1076_v7 = vcombine.low %v1072_v63, %v1073_v2 }
  0x9b   : > { %v1110_v5 = vadd.f32 %v1340_v23, %v1109_v40  ;;  %v1083_v12 = vrot.slane %v1076_v7, %v1735_v57 }
  0x9d   : > { %1341 = vst [vmem:[%s1536_s9 + $0xb8] sm:$0x3f] %v1110_v5  ;;  %v1090_v9 = vrot.slane %v1083_v12, %v1735_v57 }
  0x9f   : > { %v1092_v33 = vmul.f32 %v1715_v44, %v1090_v9 }
  0xa1   : > { %v1115_v29 = vrot.slane %v1092_v33, 1 }
  0xa3   : > { %v1117_v52 = vadd.f32 %v1115_v29, %v1092_v33 }
  0xa5   : > { %v1118_v15 = vadd.f32 %v1342_v43, %v1117_v52 }
  0xa7   : > { %1343 = vst [vmem:[%s1536_s9 + $0xc0] sm:$0x1] %v1118_v15 }
  0xa8 PF: > { %s16_s23 = sadd.s32 1, %s1461_s23   ;;  %s1984_s21 = smov %s1457_s22 }
  0xa9   : > { %p13_p5 = scmp.ge.s32.totalorder %s16_s23, 4   ;;  %s1985_s22 = smov %s1987_s24 }
  0xab   :  { %15 = sbr.rel (!%p13_p5) target bundleno = 2 (0x2), region = 117 }

</bundles_post_ra>
